<compile_context>
chip_gen: v5e
topology: v5e:2x2
jax: 0.10.0
libtpu: 0.0.40
codegen_flags: <defaults>
</compile_context>

<pallas_src>
import jax
import jax.numpy as jnp
import numpy as np
from jax.experimental import pallas as pl
from jax.experimental.pallas import tpu as pltpu


# ---------------------------------------------------------------------------
# Parameter construction (deterministic, synthetic).
#   6 ResidualUnits (0..2 -> branch a, 3..5 -> branch b) + final conv1x1(N,N).
# Each ResidualUnit: conv1x1(N,Nh) -> ReLU -> conv3x3(Nh,Nh) -> ReLU
#                    -> conv1x1(Nh,N) -> +identity -> ReLU, with Nh = N // 2.
# Weights are stored in "matmul" layout: (Cin, Cout); conv3x3 as (3,3,Cin,Cout).
# ---------------------------------------------------------------------------
def init_params(key, N):
    Nh = N // 2
    ks = jax.random.split(key, 8)
    return {
        "w1s": jax.random.normal(ks[0], (6, N, Nh), jnp.float32) * 0.1,
        "b1s": jax.random.normal(ks[1], (6, 1, Nh), jnp.float32) * 0.05,
        "w2s": jax.random.normal(ks[2], (6, 3, 3, Nh, Nh), jnp.float32) * 0.1,
        "b2s": jax.random.normal(ks[3], (6, 1, Nh), jnp.float32) * 0.05,
        "w3s": jax.random.normal(ks[4], (6, Nh, N), jnp.float32) * 0.1,
        "b3s": jax.random.normal(ks[5], (6, 1, N), jnp.float32) * 0.05,
        "wf": jax.random.normal(ks[6], (N, N), jnp.float32) * 0.1,
        "bf": jax.random.normal(ks[7], (1, N), jnp.float32) * 0.05,
    }


# ---------------------------------------------------------------------------
# Host-side weight repacking into lane-dense block matrices.
# ---------------------------------------------------------------------------
def _pack_params(params, W):
    n_units, N, Nh = params["w1s"].shape
    eye = jnp.eye(W, dtype=jnp.float32)

    # 1x1 convs -> block-diagonal (W*Cin, W*Cout)
    bd1s = jnp.einsum("xy,uio->uxiyo", eye, params["w1s"]).reshape(
        n_units, W * N, W * Nh)
    bd3s = jnp.einsum("xy,uio->uxiyo", eye, params["w3s"]).reshape(
        n_units, W * Nh, W * N)
    bdf = jnp.einsum("xy,io->xiyo", eye, params["wf"]).reshape(W * N, W * N)

    # 3x3 conv -> per-dy banded matrix (dx taps + x zero-padding folded in),
    # stacked along K so the conv is one matmul against (3*W*Nh, W*Nh).
    m2_units = []
    for u in range(n_units):
        per_dy = []
        for dy in range(3):
            m = sum(
                jnp.einsum("xy,io->xiyo",
                           jnp.eye(W, k=1 - dx, dtype=jnp.float32),
                           params["w2s"][u, dy, dx])
                for dx in range(3))
            per_dy.append(m.reshape(W * Nh, W * Nh))
        m2_units.append(jnp.concatenate(per_dy, axis=0))      # (3*W*Nh, W*Nh)
    m2s = jnp.stack(m2_units, axis=0)                          # (6, 3*W*Nh, W*Nh)

    packed = {
        "bd1s": bd1s.astype(jnp.bfloat16),
        "m2s": m2s.astype(jnp.bfloat16),
        "bd3s": bd3s.astype(jnp.bfloat16),
        "bdf": bdf.astype(jnp.bfloat16),
        # biases tiled to the (W*C) lane layout, kept f32
        "b1t": jnp.tile(params["b1s"], (1, 1, W)),             # (6, 1, W*Nh)
        "b2t": jnp.tile(params["b2s"], (1, 1, W)),             # (6, 1, W*Nh)
        "b3t": jnp.tile(params["b3s"], (1, 1, W)),             # (6, 1, W*N)
        "bft": jnp.tile(params["bf"], (1, W)),                 # (1, W*N)
    }
    return packed


# ---------------------------------------------------------------------------
# Pallas kernel
# ---------------------------------------------------------------------------
def attention_block_pallas(x_nhwc, params):
    B, H, W, N = x_nhwc.shape
    Nh = N // 2
    WN = W * N
    WNh = W * Nh

    pk = _pack_params(params, W)
    x2d = x_nhwc.reshape(B, H, WN)         # lane-dense HBM layout

    def kernel(x_ref, bd1_ref, b1_ref, m2_ref, b2_ref, bd3_ref, b3_ref,
               wf_ref, bf_ref, o_ref):
        xb = x_ref[0]                                        # (H, W*N) f32

        def residual_unit(z, u):
            # conv1x1 (N -> Nh) + ReLU : one lane-dense matmul
            h1 = jax.nn.relu(
                jnp.dot(z.astype(jnp.bfloat16), bd1_ref[u],
                        preferred_element_type=jnp.float32) + b1_ref[u])

            # conv3x3 (Nh -> Nh, pad=1) + ReLU : zero-pad rows, concat the
            # 3 row taps on lanes, one matmul against the banded weight.
            zrow = jnp.zeros((1, WNh), jnp.float32)
            hp = jnp.concatenate([zrow, h1, zrow], axis=0)   # (H+2, W*Nh)
            taps = jnp.concatenate(
                [hp[0:H], hp[1:H + 1], hp[2:H + 2]], axis=1)  # (H, 3*W*Nh)
            h2 = jax.nn.relu(
                jnp.dot(taps.astype(jnp.bfloat16), m2_ref[u],
                        preferred_element_type=jnp.float32) + b2_ref[u])

            # conv1x1 (Nh -> N), residual add (f32), ReLU
            h3 = jnp.dot(h2.astype(jnp.bfloat16), bd3_ref[u],
                         preferred_element_type=jnp.float32) + b3_ref[u]
            return jax.nn.relu(h3 + z)

        # branch a: 3 residual units
        a = xb
        for u in range(3):
            a = residual_unit(a, u)

        # branch b: 3 residual units + conv1x1(N, N)
        b = xb
        for u in range(3, 6):
            b = residual_unit(b, u)
        b = jnp.dot(b.astype(jnp.bfloat16), wf_ref[...],
                    preferred_element_type=jnp.float32) + bf_ref[...]

        # gating + residual, lane-dense unmasked store
        o_ref[0] = a * jax.nn.sigmoid(b) + xb

    full = lambda arr: pl.BlockSpec(arr.shape, lambda i: (0,) * arr.ndim)

    out2d = pl.pallas_call(
        kernel,
        out_shape=jax.ShapeDtypeStruct((B, H, WN), jnp.float32),
        grid=(B,),
        in_specs=[
            pl.BlockSpec((1, H, WN), lambda i: (i, 0, 0)),
            full(pk["bd1s"]), full(pk["b1t"]),
            full(pk["m2s"]), full(pk["b2t"]),
            full(pk["bd3s"]), full(pk["b3t"]),
            full(pk["bdf"]), full(pk["bft"]),
        ],
        out_specs=pl.BlockSpec((1, H, WN), lambda i: (i, 0, 0)),
        compiler_params=pltpu.CompilerParams(
            dimension_semantics=("parallel",)),
    )(x2d, pk["bd1s"], pk["b1t"], pk["m2s"], pk["b2t"],
      pk["bd3s"], pk["b3t"], pk["bdf"], pk["bft"])

    return out2d.reshape(B, H, W, N)


# ---------------------------------------------------------------------------
# Pure-JAX reference (NHWC, f32 throughout) for verification.
# ---------------------------------------------------------------------------
def attention_block_ref(x, params):
    def residual_unit(z, u):
        h = jax.nn.relu(
            jnp.einsum("bhwc,cd->bhwd", z, params["w1s"][u]) + params["b1s"][u])
        h = jax.lax.conv_general_dilated(
            h, params["w2s"][u], window_strides=(1, 1),
            padding=((1, 1), (1, 1)),
            dimension_numbers=("NHWC", "HWIO", "NHWC"))
        h = jax.nn.relu(h + params["b2s"][u])
        h = jnp.einsum("bhwc,cd->bhwd", h, params["w3s"][u]) + params["b3s"][u]
        return jax.nn.relu(h + z)

    a = x
    for u in range(3):
        a = residual_unit(a, u)
    b = x
    for u in range(3, 6):
        b = residual_unit(b, u)
    b = jnp.einsum("bhwc,cd->bhwd", b, params["wf"]) + params["bf"]
    return a * jax.nn.sigmoid(b) + x


if __name__ == "__main__":
    B, N, H, W = 2, 8, 16, 16   # NCHW equivalent: (2, 8, 16, 16); W*N = 128

    key = jax.random.PRNGKey(0)
    kx, kp = jax.random.split(key)
    x = jax.random.normal(kx, (B, H, W, N), jnp.float32)   # NHWC
    params = init_params(kp, N)

    out = attention_block_pallas(x, params)
    out = jax.block_until_ready(out)

    ref = jax.block_until_ready(attention_block_ref(x, params))
    np.testing.assert_allclose(np.asarray(out), np.asarray(ref),
                               rtol=1e-2, atol=1e-2)

    print("KERNEL_OK")
</pallas_src>

<mosaic_0001>
module attributes {stable_mosaic.version = 11 : i64} {
  func.func @kernel(%arg0: i32, %arg1: memref<1x16x128xf32, #tpu.memory_space<vmem>>, %arg2: memref<6x128x64xbf16, #tpu.memory_space<vmem>>, %arg3: memref<6x1x64xf32, #tpu.memory_space<vmem>>, %arg4: memref<6x192x64xbf16, #tpu.memory_space<vmem>>, %arg5: memref<6x1x64xf32, #tpu.memory_space<vmem>>, %arg6: memref<6x64x128xbf16, #tpu.memory_space<vmem>>, %arg7: memref<6x1x128xf32, #tpu.memory_space<vmem>>, %arg8: memref<128x128xbf16, #tpu.memory_space<vmem>>, %arg9: memref<1x128xf32, #tpu.memory_space<vmem>>, %arg10: memref<1x16x128xf32, #tpu.memory_space<vmem>>) attributes {dimension_semantics = [#tpu.dimension_semantics<parallel>], iteration_bounds = array<i64: 2>, scalar_prefetch = 0 : i64, scratch_operands = 0 : i64, tpu.core_type = #tpu.core_type<tc>, window_params = [{transform_indices = @transform_0, window_bounds = array<i64: 1, 16, 128>}, {pipeline_mode = #tpu.pipeline_mode<synchronous>, transform_indices = @transform_1, window_bounds = array<i64: 6, 128, 64>}, {pipeline_mode = #tpu.pipeline_mode<synchronous>, transform_indices = @transform_2, window_bounds = array<i64: 6, 1, 64>}, {pipeline_mode = #tpu.pipeline_mode<synchronous>, transform_indices = @transform_3, window_bounds = array<i64: 6, 192, 64>}, {pipeline_mode = #tpu.pipeline_mode<synchronous>, transform_indices = @transform_4, window_bounds = array<i64: 6, 1, 64>}, {pipeline_mode = #tpu.pipeline_mode<synchronous>, transform_indices = @transform_5, window_bounds = array<i64: 6, 64, 128>}, {pipeline_mode = #tpu.pipeline_mode<synchronous>, transform_indices = @transform_6, window_bounds = array<i64: 6, 1, 128>}, {pipeline_mode = #tpu.pipeline_mode<synchronous>, transform_indices = @transform_7, window_bounds = array<i64: 128, 128>}, {pipeline_mode = #tpu.pipeline_mode<synchronous>, transform_indices = @transform_8, window_bounds = array<i64: 1, 128>}, {transform_indices = @transform_9, window_bounds = array<i64: 1, 16, 128>}]} {
    %c0 = arith.constant 0 : index
    %c0_0 = arith.constant 0 : index
    %c0_1 = arith.constant 0 : index
    %0 = vector.load %arg1[%c0, %c0_0, %c0_1] : memref<1x16x128xf32, #tpu.memory_space<vmem>>, vector<1x16x128xf32>
    %1 = vector.shape_cast %0 : vector<1x16x128xf32> to vector<16x128xf32>
    %2 = arith.truncf %1 : vector<16x128xf32> to vector<16x128xbf16>
    %c0_2 = arith.constant 0 : index
    %c0_3 = arith.constant 0 : index
    %c0_4 = arith.constant 0 : index
    %3 = vector.load %arg2[%c0_2, %c0_3, %c0_4] : memref<6x128x64xbf16, #tpu.memory_space<vmem>>, vector<1x128x64xbf16>
    %4 = vector.shape_cast %3 : vector<1x128x64xbf16> to vector<128x64xbf16>
    %cst = arith.constant dense<0.000000e+00> : vector<16x64xf32>
    %5 = tpu.matmul %2, %4, %cst {dimension_numbers = #tpu.dot_dimension_numbers<[1], [0], [0], [1], [0, 0, 1, 1], [], []>} : vector<16x128xbf16>, vector<128x64xbf16>, vector<16x64xf32> -> vector<16x64xf32>
    %c0_5 = arith.constant 0 : index
    %c0_6 = arith.constant 0 : index
    %c0_7 = arith.constant 0 : index
    %6 = vector.load %arg3[%c0_5, %c0_6, %c0_7] : memref<6x1x64xf32, #tpu.memory_space<vmem>>, vector<1x1x64xf32>
    %7 = vector.shape_cast %6 : vector<1x1x64xf32> to vector<1x64xf32>
    %8 = vector.broadcast %7 : vector<1x64xf32> to vector<16x64xf32>
    %9 = arith.addf %5, %8 : vector<16x64xf32>
    %cst_8 = arith.constant 0.000000e+00 : f32
    %10 = vector.broadcast %cst_8 : f32 to vector<16x64xf32>
    %11 = arith.maximumf %9, %10 : vector<16x64xf32>
    %cst_9 = arith.constant 0.000000e+00 : f32
    %12 = vector.broadcast %cst_9 : f32 to vector<1x64xf32>
    %13 = tpu.concatenate %12, %11, %12 in 0 : vector<1x64xf32>, vector<16x64xf32>, vector<1x64xf32> -> vector<18x64xf32>
    %14 = vector.extract_strided_slice %13 {offsets = [0, 0], sizes = [16, 64], strides = [1, 1]} : vector<18x64xf32> to vector<16x64xf32>
    %15 = vector.extract_strided_slice %13 {offsets = [1, 0], sizes = [16, 64], strides = [1, 1]} : vector<18x64xf32> to vector<16x64xf32>
    %16 = vector.extract_strided_slice %13 {offsets = [2, 0], sizes = [16, 64], strides = [1, 1]} : vector<18x64xf32> to vector<16x64xf32>
    %17 = tpu.concatenate %14, %15, %16 in 1 : vector<16x64xf32>, vector<16x64xf32>, vector<16x64xf32> -> vector<16x192xf32>
    %18 = arith.truncf %17 : vector<16x192xf32> to vector<16x192xbf16>
    %c0_10 = arith.constant 0 : index
    %c0_11 = arith.constant 0 : index
    %c0_12 = arith.constant 0 : index
    %19 = vector.load %arg4[%c0_10, %c0_11, %c0_12] : memref<6x192x64xbf16, #tpu.memory_space<vmem>>, vector<1x192x64xbf16>
    %20 = vector.shape_cast %19 : vector<1x192x64xbf16> to vector<192x64xbf16>
    %cst_13 = arith.constant dense<0.000000e+00> : vector<16x64xf32>
    %21 = tpu.matmul %18, %20, %cst_13 {dimension_numbers = #tpu.dot_dimension_numbers<[1], [0], [0], [1], [0, 0, 1, 1], [], []>} : vector<16x192xbf16>, vector<192x64xbf16>, vector<16x64xf32> -> vector<16x64xf32>
    %c0_14 = arith.constant 0 : index
    %c0_15 = arith.constant 0 : index
    %c0_16 = arith.constant 0 : index
    %22 = vector.load %arg5[%c0_14, %c0_15, %c0_16] : memref<6x1x64xf32, #tpu.memory_space<vmem>>, vector<1x1x64xf32>
    %23 = vector.shape_cast %22 : vector<1x1x64xf32> to vector<1x64xf32>
    %24 = vector.broadcast %23 : vector<1x64xf32> to vector<16x64xf32>
    %25 = arith.addf %21, %24 : vector<16x64xf32>
    %cst_17 = arith.constant 0.000000e+00 : f32
    %26 = vector.broadcast %cst_17 : f32 to vector<16x64xf32>
    %27 = arith.maximumf %25, %26 : vector<16x64xf32>
    %28 = arith.truncf %27 : vector<16x64xf32> to vector<16x64xbf16>
    %c0_18 = arith.constant 0 : index
    %c0_19 = arith.constant 0 : index
    %c0_20 = arith.constant 0 : index
    %29 = vector.load %arg6[%c0_18, %c0_19, %c0_20] : memref<6x64x128xbf16, #tpu.memory_space<vmem>>, vector<1x64x128xbf16>
    %30 = vector.shape_cast %29 : vector<1x64x128xbf16> to vector<64x128xbf16>
    %cst_21 = arith.constant dense<0.000000e+00> : vector<16x128xf32>
    %31 = tpu.matmul %28, %30, %cst_21 {dimension_numbers = #tpu.dot_dimension_numbers<[1], [0], [0], [1], [0, 0, 1, 1], [], []>} : vector<16x64xbf16>, vector<64x128xbf16>, vector<16x128xf32> -> vector<16x128xf32>
    %c0_22 = arith.constant 0 : index
    %c0_23 = arith.constant 0 : index
    %c0_24 = arith.constant 0 : index
    %32 = vector.load %arg7[%c0_22, %c0_23, %c0_24] : memref<6x1x128xf32, #tpu.memory_space<vmem>>, vector<1x1x128xf32>
    %33 = vector.shape_cast %32 : vector<1x1x128xf32> to vector<1x128xf32>
    %34 = vector.broadcast %33 : vector<1x128xf32> to vector<16x128xf32>
    %35 = arith.addf %31, %34 : vector<16x128xf32>
    %36 = arith.addf %35, %1 : vector<16x128xf32>
    %cst_25 = arith.constant 0.000000e+00 : f32
    %37 = vector.broadcast %cst_25 : f32 to vector<16x128xf32>
    %38 = arith.maximumf %36, %37 : vector<16x128xf32>
    %39 = arith.truncf %38 : vector<16x128xf32> to vector<16x128xbf16>
    %c1 = arith.constant 1 : index
    %c0_26 = arith.constant 0 : index
    %c0_27 = arith.constant 0 : index
    %40 = vector.load %arg2[%c1, %c0_26, %c0_27] : memref<6x128x64xbf16, #tpu.memory_space<vmem>>, vector<1x128x64xbf16>
    %41 = vector.shape_cast %40 : vector<1x128x64xbf16> to vector<128x64xbf16>
    %cst_28 = arith.constant dense<0.000000e+00> : vector<16x64xf32>
    %42 = tpu.matmul %39, %41, %cst_28 {dimension_numbers = #tpu.dot_dimension_numbers<[1], [0], [0], [1], [0, 0, 1, 1], [], []>} : vector<16x128xbf16>, vector<128x64xbf16>, vector<16x64xf32> -> vector<16x64xf32>
    %c1_29 = arith.constant 1 : index
    %c0_30 = arith.constant 0 : index
    %c0_31 = arith.constant 0 : index
    %43 = vector.load %arg3[%c1_29, %c0_30, %c0_31] : memref<6x1x64xf32, #tpu.memory_space<vmem>>, vector<1x1x64xf32>
    %44 = vector.shape_cast %43 : vector<1x1x64xf32> to vector<1x64xf32>
    %45 = vector.broadcast %44 : vector<1x64xf32> to vector<16x64xf32>
    %46 = arith.addf %42, %45 : vector<16x64xf32>
    %cst_32 = arith.constant 0.000000e+00 : f32
    %47 = vector.broadcast %cst_32 : f32 to vector<16x64xf32>
    %48 = arith.maximumf %46, %47 : vector<16x64xf32>
    %cst_33 = arith.constant 0.000000e+00 : f32
    %49 = vector.broadcast %cst_33 : f32 to vector<1x64xf32>
    %50 = tpu.concatenate %49, %48, %49 in 0 : vector<1x64xf32>, vector<16x64xf32>, vector<1x64xf32> -> vector<18x64xf32>
    %51 = vector.extract_strided_slice %50 {offsets = [0, 0], sizes = [16, 64], strides = [1, 1]} : vector<18x64xf32> to vector<16x64xf32>
    %52 = vector.extract_strided_slice %50 {offsets = [1, 0], sizes = [16, 64], strides = [1, 1]} : vector<18x64xf32> to vector<16x64xf32>
    %53 = vector.extract_strided_slice %50 {offsets = [2, 0], sizes = [16, 64], strides = [1, 1]} : vector<18x64xf32> to vector<16x64xf32>
    %54 = tpu.concatenate %51, %52, %53 in 1 : vector<16x64xf32>, vector<16x64xf32>, vector<16x64xf32> -> vector<16x192xf32>
    %55 = arith.truncf %54 : vector<16x192xf32> to vector<16x192xbf16>
    %c1_34 = arith.constant 1 : index
    %c0_35 = arith.constant 0 : index
    %c0_36 = arith.constant 0 : index
    %56 = vector.load %arg4[%c1_34, %c0_35, %c0_36] : memref<6x192x64xbf16, #tpu.memory_space<vmem>>, vector<1x192x64xbf16>
    %57 = vector.shape_cast %56 : vector<1x192x64xbf16> to vector<192x64xbf16>
    %cst_37 = arith.constant dense<0.000000e+00> : vector<16x64xf32>
    %58 = tpu.matmul %55, %57, %cst_37 {dimension_numbers = #tpu.dot_dimension_numbers<[1], [0], [0], [1], [0, 0, 1, 1], [], []>} : vector<16x192xbf16>, vector<192x64xbf16>, vector<16x64xf32> -> vector<16x64xf32>
    %c1_38 = arith.constant 1 : index
    %c0_39 = arith.constant 0 : index
    %c0_40 = arith.constant 0 : index
    %59 = vector.load %arg5[%c1_38, %c0_39, %c0_40] : memref<6x1x64xf32, #tpu.memory_space<vmem>>, vector<1x1x64xf32>
    %60 = vector.shape_cast %59 : vector<1x1x64xf32> to vector<1x64xf32>
    %61 = vector.broadcast %60 : vector<1x64xf32> to vector<16x64xf32>
    %62 = arith.addf %58, %61 : vector<16x64xf32>
    %cst_41 = arith.constant 0.000000e+00 : f32
    %63 = vector.broadcast %cst_41 : f32 to vector<16x64xf32>
    %64 = arith.maximumf %62, %63 : vector<16x64xf32>
    %65 = arith.truncf %64 : vector<16x64xf32> to vector<16x64xbf16>
    %c1_42 = arith.constant 1 : index
    %c0_43 = arith.constant 0 : index
    %c0_44 = arith.constant 0 : index
    %66 = vector.load %arg6[%c1_42, %c0_43, %c0_44] : memref<6x64x128xbf16, #tpu.memory_space<vmem>>, vector<1x64x128xbf16>
    %67 = vector.shape_cast %66 : vector<1x64x128xbf16> to vector<64x128xbf16>
    %cst_45 = arith.constant dense<0.000000e+00> : vector<16x128xf32>
    %68 = tpu.matmul %65, %67, %cst_45 {dimension_numbers = #tpu.dot_dimension_numbers<[1], [0], [0], [1], [0, 0, 1, 1], [], []>} : vector<16x64xbf16>, vector<64x128xbf16>, vector<16x128xf32> -> vector<16x128xf32>
    %c1_46 = arith.constant 1 : index
    %c0_47 = arith.constant 0 : index
    %c0_48 = arith.constant 0 : index
    %69 = vector.load %arg7[%c1_46, %c0_47, %c0_48] : memref<6x1x128xf32, #tpu.memory_space<vmem>>, vector<1x1x128xf32>
    %70 = vector.shape_cast %69 : vector<1x1x128xf32> to vector<1x128xf32>
    %71 = vector.broadcast %70 : vector<1x128xf32> to vector<16x128xf32>
    %72 = arith.addf %68, %71 : vector<16x128xf32>
    %73 = arith.addf %72, %38 : vector<16x128xf32>
    %cst_49 = arith.constant 0.000000e+00 : f32
    %74 = vector.broadcast %cst_49 : f32 to vector<16x128xf32>
    %75 = arith.maximumf %73, %74 : vector<16x128xf32>
    %76 = arith.truncf %75 : vector<16x128xf32> to vector<16x128xbf16>
    %c2 = arith.constant 2 : index
    %c0_50 = arith.constant 0 : index
    %c0_51 = arith.constant 0 : index
    %77 = vector.load %arg2[%c2, %c0_50, %c0_51] : memref<6x128x64xbf16, #tpu.memory_space<vmem>>, vector<1x128x64xbf16>
    %78 = vector.shape_cast %77 : vector<1x128x64xbf16> to vector<128x64xbf16>
    %cst_52 = arith.constant dense<0.000000e+00> : vector<16x64xf32>
    %79 = tpu.matmul %76, %78, %cst_52 {dimension_numbers = #tpu.dot_dimension_numbers<[1], [0], [0], [1], [0, 0, 1, 1], [], []>} : vector<16x128xbf16>, vector<128x64xbf16>, vector<16x64xf32> -> vector<16x64xf32>
    %c2_53 = arith.constant 2 : index
    %c0_54 = arith.constant 0 : index
    %c0_55 = arith.constant 0 : index
    %80 = vector.load %arg3[%c2_53, %c0_54, %c0_55] : memref<6x1x64xf32, #tpu.memory_space<vmem>>, vector<1x1x64xf32>
    %81 = vector.shape_cast %80 : vector<1x1x64xf32> to vector<1x64xf32>
    %82 = vector.broadcast %81 : vector<1x64xf32> to vector<16x64xf32>
    %83 = arith.addf %79, %82 : vector<16x64xf32>
    %cst_56 = arith.constant 0.000000e+00 : f32
    %84 = vector.broadcast %cst_56 : f32 to vector<16x64xf32>
    %85 = arith.maximumf %83, %84 : vector<16x64xf32>
    %cst_57 = arith.constant 0.000000e+00 : f32
    %86 = vector.broadcast %cst_57 : f32 to vector<1x64xf32>
    %87 = tpu.concatenate %86, %85, %86 in 0 : vector<1x64xf32>, vector<16x64xf32>, vector<1x64xf32> -> vector<18x64xf32>
    %88 = vector.extract_strided_slice %87 {offsets = [0, 0], sizes = [16, 64], strides = [1, 1]} : vector<18x64xf32> to vector<16x64xf32>
    %89 = vector.extract_strided_slice %87 {offsets = [1, 0], sizes = [16, 64], strides = [1, 1]} : vector<18x64xf32> to vector<16x64xf32>
    %90 = vector.extract_strided_slice %87 {offsets = [2, 0], sizes = [16, 64], strides = [1, 1]} : vector<18x64xf32> to vector<16x64xf32>
    %91 = tpu.concatenate %88, %89, %90 in 1 : vector<16x64xf32>, vector<16x64xf32>, vector<16x64xf32> -> vector<16x192xf32>
    %92 = arith.truncf %91 : vector<16x192xf32> to vector<16x192xbf16>
    %c2_58 = arith.constant 2 : index
    %c0_59 = arith.constant 0 : index
    %c0_60 = arith.constant 0 : index
    %93 = vector.load %arg4[%c2_58, %c0_59, %c0_60] : memref<6x192x64xbf16, #tpu.memory_space<vmem>>, vector<1x192x64xbf16>
    %94 = vector.shape_cast %93 : vector<1x192x64xbf16> to vector<192x64xbf16>
    %cst_61 = arith.constant dense<0.000000e+00> : vector<16x64xf32>
    %95 = tpu.matmul %92, %94, %cst_61 {dimension_numbers = #tpu.dot_dimension_numbers<[1], [0], [0], [1], [0, 0, 1, 1], [], []>} : vector<16x192xbf16>, vector<192x64xbf16>, vector<16x64xf32> -> vector<16x64xf32>
    %c2_62 = arith.constant 2 : index
    %c0_63 = arith.constant 0 : index
    %c0_64 = arith.constant 0 : index
    %96 = vector.load %arg5[%c2_62, %c0_63, %c0_64] : memref<6x1x64xf32, #tpu.memory_space<vmem>>, vector<1x1x64xf32>
    %97 = vector.shape_cast %96 : vector<1x1x64xf32> to vector<1x64xf32>
    %98 = vector.broadcast %97 : vector<1x64xf32> to vector<16x64xf32>
    %99 = arith.addf %95, %98 : vector<16x64xf32>
    %cst_65 = arith.constant 0.000000e+00 : f32
    %100 = vector.broadcast %cst_65 : f32 to vector<16x64xf32>
    %101 = arith.maximumf %99, %100 : vector<16x64xf32>
    %102 = arith.truncf %101 : vector<16x64xf32> to vector<16x64xbf16>
    %c2_66 = arith.constant 2 : index
    %c0_67 = arith.constant 0 : index
    %c0_68 = arith.constant 0 : index
    %103 = vector.load %arg6[%c2_66, %c0_67, %c0_68] : memref<6x64x128xbf16, #tpu.memory_space<vmem>>, vector<1x64x128xbf16>
    %104 = vector.shape_cast %103 : vector<1x64x128xbf16> to vector<64x128xbf16>
    %cst_69 = arith.constant dense<0.000000e+00> : vector<16x128xf32>
    %105 = tpu.matmul %102, %104, %cst_69 {dimension_numbers = #tpu.dot_dimension_numbers<[1], [0], [0], [1], [0, 0, 1, 1], [], []>} : vector<16x64xbf16>, vector<64x128xbf16>, vector<16x128xf32> -> vector<16x128xf32>
    %c2_70 = arith.constant 2 : index
    %c0_71 = arith.constant 0 : index
    %c0_72 = arith.constant 0 : index
    %106 = vector.load %arg7[%c2_70, %c0_71, %c0_72] : memref<6x1x128xf32, #tpu.memory_space<vmem>>, vector<1x1x128xf32>
    %107 = vector.shape_cast %106 : vector<1x1x128xf32> to vector<1x128xf32>
    %108 = vector.broadcast %107 : vector<1x128xf32> to vector<16x128xf32>
    %109 = arith.addf %105, %108 : vector<16x128xf32>
    %110 = arith.addf %109, %75 : vector<16x128xf32>
    %cst_73 = arith.constant 0.000000e+00 : f32
    %111 = vector.broadcast %cst_73 : f32 to vector<16x128xf32>
    %112 = arith.maximumf %110, %111 : vector<16x128xf32>
    %113 = arith.truncf %1 : vector<16x128xf32> to vector<16x128xbf16>
    %c3 = arith.constant 3 : index
    %c0_74 = arith.constant 0 : index
    %c0_75 = arith.constant 0 : index
    %114 = vector.load %arg2[%c3, %c0_74, %c0_75] : memref<6x128x64xbf16, #tpu.memory_space<vmem>>, vector<1x128x64xbf16>
    %115 = vector.shape_cast %114 : vector<1x128x64xbf16> to vector<128x64xbf16>
    %cst_76 = arith.constant dense<0.000000e+00> : vector<16x64xf32>
    %116 = tpu.matmul %113, %115, %cst_76 {dimension_numbers = #tpu.dot_dimension_numbers<[1], [0], [0], [1], [0, 0, 1, 1], [], []>} : vector<16x128xbf16>, vector<128x64xbf16>, vector<16x64xf32> -> vector<16x64xf32>
    %c3_77 = arith.constant 3 : index
    %c0_78 = arith.constant 0 : index
    %c0_79 = arith.constant 0 : index
    %117 = vector.load %arg3[%c3_77, %c0_78, %c0_79] : memref<6x1x64xf32, #tpu.memory_space<vmem>>, vector<1x1x64xf32>
    %118 = vector.shape_cast %117 : vector<1x1x64xf32> to vector<1x64xf32>
    %119 = vector.broadcast %118 : vector<1x64xf32> to vector<16x64xf32>
    %120 = arith.addf %116, %119 : vector<16x64xf32>
    %cst_80 = arith.constant 0.000000e+00 : f32
    %121 = vector.broadcast %cst_80 : f32 to vector<16x64xf32>
    %122 = arith.maximumf %120, %121 : vector<16x64xf32>
    %cst_81 = arith.constant 0.000000e+00 : f32
    %123 = vector.broadcast %cst_81 : f32 to vector<1x64xf32>
    %124 = tpu.concatenate %123, %122, %123 in 0 : vector<1x64xf32>, vector<16x64xf32>, vector<1x64xf32> -> vector<18x64xf32>
    %125 = vector.extract_strided_slice %124 {offsets = [0, 0], sizes = [16, 64], strides = [1, 1]} : vector<18x64xf32> to vector<16x64xf32>
    %126 = vector.extract_strided_slice %124 {offsets = [1, 0], sizes = [16, 64], strides = [1, 1]} : vector<18x64xf32> to vector<16x64xf32>
    %127 = vector.extract_strided_slice %124 {offsets = [2, 0], sizes = [16, 64], strides = [1, 1]} : vector<18x64xf32> to vector<16x64xf32>
    %128 = tpu.concatenate %125, %126, %127 in 1 : vector<16x64xf32>, vector<16x64xf32>, vector<16x64xf32> -> vector<16x192xf32>
    %129 = arith.truncf %128 : vector<16x192xf32> to vector<16x192xbf16>
    %c3_82 = arith.constant 3 : index
    %c0_83 = arith.constant 0 : index
    %c0_84 = arith.constant 0 : index
    %130 = vector.load %arg4[%c3_82, %c0_83, %c0_84] : memref<6x192x64xbf16, #tpu.memory_space<vmem>>, vector<1x192x64xbf16>
    %131 = vector.shape_cast %130 : vector<1x192x64xbf16> to vector<192x64xbf16>
    %cst_85 = arith.constant dense<0.000000e+00> : vector<16x64xf32>
    %132 = tpu.matmul %129, %131, %cst_85 {dimension_numbers = #tpu.dot_dimension_numbers<[1], [0], [0], [1], [0, 0, 1, 1], [], []>} : vector<16x192xbf16>, vector<192x64xbf16>, vector<16x64xf32> -> vector<16x64xf32>
    %c3_86 = arith.constant 3 : index
    %c0_87 = arith.constant 0 : index
    %c0_88 = arith.constant 0 : index
    %133 = vector.load %arg5[%c3_86, %c0_87, %c0_88] : memref<6x1x64xf32, #tpu.memory_space<vmem>>, vector<1x1x64xf32>
    %134 = vector.shape_cast %133 : vector<1x1x64xf32> to vector<1x64xf32>
    %135 = vector.broadcast %134 : vector<1x64xf32> to vector<16x64xf32>
    %136 = arith.addf %132, %135 : vector<16x64xf32>
    %cst_89 = arith.constant 0.000000e+00 : f32
    %137 = vector.broadcast %cst_89 : f32 to vector<16x64xf32>
    %138 = arith.maximumf %136, %137 : vector<16x64xf32>
    %139 = arith.truncf %138 : vector<16x64xf32> to vector<16x64xbf16>
    %c3_90 = arith.constant 3 : index
    %c0_91 = arith.constant 0 : index
    %c0_92 = arith.constant 0 : index
    %140 = vector.load %arg6[%c3_90, %c0_91, %c0_92] : memref<6x64x128xbf16, #tpu.memory_space<vmem>>, vector<1x64x128xbf16>
    %141 = vector.shape_cast %140 : vector<1x64x128xbf16> to vector<64x128xbf16>
    %cst_93 = arith.constant dense<0.000000e+00> : vector<16x128xf32>
    %142 = tpu.matmul %139, %141, %cst_93 {dimension_numbers = #tpu.dot_dimension_numbers<[1], [0], [0], [1], [0, 0, 1, 1], [], []>} : vector<16x64xbf16>, vector<64x128xbf16>, vector<16x128xf32> -> vector<16x128xf32>
    %c3_94 = arith.constant 3 : index
    %c0_95 = arith.constant 0 : index
    %c0_96 = arith.constant 0 : index
    %143 = vector.load %arg7[%c3_94, %c0_95, %c0_96] : memref<6x1x128xf32, #tpu.memory_space<vmem>>, vector<1x1x128xf32>
    %144 = vector.shape_cast %143 : vector<1x1x128xf32> to vector<1x128xf32>
    %145 = vector.broadcast %144 : vector<1x128xf32> to vector<16x128xf32>
    %146 = arith.addf %142, %145 : vector<16x128xf32>
    %147 = arith.addf %146, %1 : vector<16x128xf32>
    %cst_97 = arith.constant 0.000000e+00 : f32
    %148 = vector.broadcast %cst_97 : f32 to vector<16x128xf32>
    %149 = arith.maximumf %147, %148 : vector<16x128xf32>
    %150 = arith.truncf %149 : vector<16x128xf32> to vector<16x128xbf16>
    %c4 = arith.constant 4 : index
    %c0_98 = arith.constant 0 : index
    %c0_99 = arith.constant 0 : index
    %151 = vector.load %arg2[%c4, %c0_98, %c0_99] : memref<6x128x64xbf16, #tpu.memory_space<vmem>>, vector<1x128x64xbf16>
    %152 = vector.shape_cast %151 : vector<1x128x64xbf16> to vector<128x64xbf16>
    %cst_100 = arith.constant dense<0.000000e+00> : vector<16x64xf32>
    %153 = tpu.matmul %150, %152, %cst_100 {dimension_numbers = #tpu.dot_dimension_numbers<[1], [0], [0], [1], [0, 0, 1, 1], [], []>} : vector<16x128xbf16>, vector<128x64xbf16>, vector<16x64xf32> -> vector<16x64xf32>
    %c4_101 = arith.constant 4 : index
    %c0_102 = arith.constant 0 : index
    %c0_103 = arith.constant 0 : index
    %154 = vector.load %arg3[%c4_101, %c0_102, %c0_103] : memref<6x1x64xf32, #tpu.memory_space<vmem>>, vector<1x1x64xf32>
    %155 = vector.shape_cast %154 : vector<1x1x64xf32> to vector<1x64xf32>
    %156 = vector.broadcast %155 : vector<1x64xf32> to vector<16x64xf32>
    %157 = arith.addf %153, %156 : vector<16x64xf32>
    %cst_104 = arith.constant 0.000000e+00 : f32
    %158 = vector.broadcast %cst_104 : f32 to vector<16x64xf32>
    %159 = arith.maximumf %157, %158 : vector<16x64xf32>
    %cst_105 = arith.constant 0.000000e+00 : f32
    %160 = vector.broadcast %cst_105 : f32 to vector<1x64xf32>
    %161 = tpu.concatenate %160, %159, %160 in 0 : vector<1x64xf32>, vector<16x64xf32>, vector<1x64xf32> -> vector<18x64xf32>
    %162 = vector.extract_strided_slice %161 {offsets = [0, 0], sizes = [16, 64], strides = [1, 1]} : vector<18x64xf32> to vector<16x64xf32>
    %163 = vector.extract_strided_slice %161 {offsets = [1, 0], sizes = [16, 64], strides = [1, 1]} : vector<18x64xf32> to vector<16x64xf32>
    %164 = vector.extract_strided_slice %161 {offsets = [2, 0], sizes = [16, 64], strides = [1, 1]} : vector<18x64xf32> to vector<16x64xf32>
    %165 = tpu.concatenate %162, %163, %164 in 1 : vector<16x64xf32>, vector<16x64xf32>, vector<16x64xf32> -> vector<16x192xf32>
    %166 = arith.truncf %165 : vector<16x192xf32> to vector<16x192xbf16>
    %c4_106 = arith.constant 4 : index
    %c0_107 = arith.constant 0 : index
    %c0_108 = arith.constant 0 : index
    %167 = vector.load %arg4[%c4_106, %c0_107, %c0_108] : memref<6x192x64xbf16, #tpu.memory_space<vmem>>, vector<1x192x64xbf16>
    %168 = vector.shape_cast %167 : vector<1x192x64xbf16> to vector<192x64xbf16>
    %cst_109 = arith.constant dense<0.000000e+00> : vector<16x64xf32>
    %169 = tpu.matmul %166, %168, %cst_109 {dimension_numbers = #tpu.dot_dimension_numbers<[1], [0], [0], [1], [0, 0, 1, 1], [], []>} : vector<16x192xbf16>, vector<192x64xbf16>, vector<16x64xf32> -> vector<16x64xf32>
    %c4_110 = arith.constant 4 : index
    %c0_111 = arith.constant 0 : index
    %c0_112 = arith.constant 0 : index
    %170 = vector.load %arg5[%c4_110, %c0_111, %c0_112] : memref<6x1x64xf32, #tpu.memory_space<vmem>>, vector<1x1x64xf32>
    %171 = vector.shape_cast %170 : vector<1x1x64xf32> to vector<1x64xf32>
    %172 = vector.broadcast %171 : vector<1x64xf32> to vector<16x64xf32>
    %173 = arith.addf %169, %172 : vector<16x64xf32>
    %cst_113 = arith.constant 0.000000e+00 : f32
    %174 = vector.broadcast %cst_113 : f32 to vector<16x64xf32>
    %175 = arith.maximumf %173, %174 : vector<16x64xf32>
    %176 = arith.truncf %175 : vector<16x64xf32> to vector<16x64xbf16>
    %c4_114 = arith.constant 4 : index
    %c0_115 = arith.constant 0 : index
    %c0_116 = arith.constant 0 : index
    %177 = vector.load %arg6[%c4_114, %c0_115, %c0_116] : memref<6x64x128xbf16, #tpu.memory_space<vmem>>, vector<1x64x128xbf16>
    %178 = vector.shape_cast %177 : vector<1x64x128xbf16> to vector<64x128xbf16>
    %cst_117 = arith.constant dense<0.000000e+00> : vector<16x128xf32>
    %179 = tpu.matmul %176, %178, %cst_117 {dimension_numbers = #tpu.dot_dimension_numbers<[1], [0], [0], [1], [0, 0, 1, 1], [], []>} : vector<16x64xbf16>, vector<64x128xbf16>, vector<16x128xf32> -> vector<16x128xf32>
    %c4_118 = arith.constant 4 : index
    %c0_119 = arith.constant 0 : index
    %c0_120 = arith.constant 0 : index
    %180 = vector.load %arg7[%c4_118, %c0_119, %c0_120] : memref<6x1x128xf32, #tpu.memory_space<vmem>>, vector<1x1x128xf32>
    %181 = vector.shape_cast %180 : vector<1x1x128xf32> to vector<1x128xf32>
    %182 = vector.broadcast %181 : vector<1x128xf32> to vector<16x128xf32>
    %183 = arith.addf %179, %182 : vector<16x128xf32>
    %184 = arith.addf %183, %149 : vector<16x128xf32>
    %cst_121 = arith.constant 0.000000e+00 : f32
    %185 = vector.broadcast %cst_121 : f32 to vector<16x128xf32>
    %186 = arith.maximumf %184, %185 : vector<16x128xf32>
    %187 = arith.truncf %186 : vector<16x128xf32> to vector<16x128xbf16>
    %c5 = arith.constant 5 : index
    %c0_122 = arith.constant 0 : index
    %c0_123 = arith.constant 0 : index
    %188 = vector.load %arg2[%c5, %c0_122, %c0_123] : memref<6x128x64xbf16, #tpu.memory_space<vmem>>, vector<1x128x64xbf16>
    %189 = vector.shape_cast %188 : vector<1x128x64xbf16> to vector<128x64xbf16>
    %cst_124 = arith.constant dense<0.000000e+00> : vector<16x64xf32>
    %190 = tpu.matmul %187, %189, %cst_124 {dimension_numbers = #tpu.dot_dimension_numbers<[1], [0], [0], [1], [0, 0, 1, 1], [], []>} : vector<16x128xbf16>, vector<128x64xbf16>, vector<16x64xf32> -> vector<16x64xf32>
    %c5_125 = arith.constant 5 : index
    %c0_126 = arith.constant 0 : index
    %c0_127 = arith.constant 0 : index
    %191 = vector.load %arg3[%c5_125, %c0_126, %c0_127] : memref<6x1x64xf32, #tpu.memory_space<vmem>>, vector<1x1x64xf32>
    %192 = vector.shape_cast %191 : vector<1x1x64xf32> to vector<1x64xf32>
    %193 = vector.broadcast %192 : vector<1x64xf32> to vector<16x64xf32>
    %194 = arith.addf %190, %193 : vector<16x64xf32>
    %cst_128 = arith.constant 0.000000e+00 : f32
    %195 = vector.broadcast %cst_128 : f32 to vector<16x64xf32>
    %196 = arith.maximumf %194, %195 : vector<16x64xf32>
    %cst_129 = arith.constant 0.000000e+00 : f32
    %197 = vector.broadcast %cst_129 : f32 to vector<1x64xf32>
    %198 = tpu.concatenate %197, %196, %197 in 0 : vector<1x64xf32>, vector<16x64xf32>, vector<1x64xf32> -> vector<18x64xf32>
    %199 = vector.extract_strided_slice %198 {offsets = [0, 0], sizes = [16, 64], strides = [1, 1]} : vector<18x64xf32> to vector<16x64xf32>
    %200 = vector.extract_strided_slice %198 {offsets = [1, 0], sizes = [16, 64], strides = [1, 1]} : vector<18x64xf32> to vector<16x64xf32>
    %201 = vector.extract_strided_slice %198 {offsets = [2, 0], sizes = [16, 64], strides = [1, 1]} : vector<18x64xf32> to vector<16x64xf32>
    %202 = tpu.concatenate %199, %200, %201 in 1 : vector<16x64xf32>, vector<16x64xf32>, vector<16x64xf32> -> vector<16x192xf32>
    %203 = arith.truncf %202 : vector<16x192xf32> to vector<16x192xbf16>
    %c5_130 = arith.constant 5 : index
    %c0_131 = arith.constant 0 : index
    %c0_132 = arith.constant 0 : index
    %204 = vector.load %arg4[%c5_130, %c0_131, %c0_132] : memref<6x192x64xbf16, #tpu.memory_space<vmem>>, vector<1x192x64xbf16>
    %205 = vector.shape_cast %204 : vector<1x192x64xbf16> to vector<192x64xbf16>
    %cst_133 = arith.constant dense<0.000000e+00> : vector<16x64xf32>
    %206 = tpu.matmul %203, %205, %cst_133 {dimension_numbers = #tpu.dot_dimension_numbers<[1], [0], [0], [1], [0, 0, 1, 1], [], []>} : vector<16x192xbf16>, vector<192x64xbf16>, vector<16x64xf32> -> vector<16x64xf32>
    %c5_134 = arith.constant 5 : index
    %c0_135 = arith.constant 0 : index
    %c0_136 = arith.constant 0 : index
    %207 = vector.load %arg5[%c5_134, %c0_135, %c0_136] : memref<6x1x64xf32, #tpu.memory_space<vmem>>, vector<1x1x64xf32>
    %208 = vector.shape_cast %207 : vector<1x1x64xf32> to vector<1x64xf32>
    %209 = vector.broadcast %208 : vector<1x64xf32> to vector<16x64xf32>
    %210 = arith.addf %206, %209 : vector<16x64xf32>
    %cst_137 = arith.constant 0.000000e+00 : f32
    %211 = vector.broadcast %cst_137 : f32 to vector<16x64xf32>
    %212 = arith.maximumf %210, %211 : vector<16x64xf32>
    %213 = arith.truncf %212 : vector<16x64xf32> to vector<16x64xbf16>
    %c5_138 = arith.constant 5 : index
    %c0_139 = arith.constant 0 : index
    %c0_140 = arith.constant 0 : index
    %214 = vector.load %arg6[%c5_138, %c0_139, %c0_140] : memref<6x64x128xbf16, #tpu.memory_space<vmem>>, vector<1x64x128xbf16>
    %215 = vector.shape_cast %214 : vector<1x64x128xbf16> to vector<64x128xbf16>
    %cst_141 = arith.constant dense<0.000000e+00> : vector<16x128xf32>
    %216 = tpu.matmul %213, %215, %cst_141 {dimension_numbers = #tpu.dot_dimension_numbers<[1], [0], [0], [1], [0, 0, 1, 1], [], []>} : vector<16x64xbf16>, vector<64x128xbf16>, vector<16x128xf32> -> vector<16x128xf32>
    %c5_142 = arith.constant 5 : index
    %c0_143 = arith.constant 0 : index
    %c0_144 = arith.constant 0 : index
    %217 = vector.load %arg7[%c5_142, %c0_143, %c0_144] : memref<6x1x128xf32, #tpu.memory_space<vmem>>, vector<1x1x128xf32>
    %218 = vector.shape_cast %217 : vector<1x1x128xf32> to vector<1x128xf32>
    %219 = vector.broadcast %218 : vector<1x128xf32> to vector<16x128xf32>
    %220 = arith.addf %216, %219 : vector<16x128xf32>
    %221 = arith.addf %220, %186 : vector<16x128xf32>
    %cst_145 = arith.constant 0.000000e+00 : f32
    %222 = vector.broadcast %cst_145 : f32 to vector<16x128xf32>
    %223 = arith.maximumf %221, %222 : vector<16x128xf32>
    %224 = arith.truncf %223 : vector<16x128xf32> to vector<16x128xbf16>
    %c0_146 = arith.constant 0 : index
    %c0_147 = arith.constant 0 : index
    %225 = vector.load %arg8[%c0_146, %c0_147] : memref<128x128xbf16, #tpu.memory_space<vmem>>, vector<128x128xbf16>
    %cst_148 = arith.constant dense<0.000000e+00> : vector<16x128xf32>
    %226 = tpu.matmul %224, %225, %cst_148 {dimension_numbers = #tpu.dot_dimension_numbers<[1], [0], [0], [1], [0, 0, 1, 1], [], []>} : vector<16x128xbf16>, vector<128x128xbf16>, vector<16x128xf32> -> vector<16x128xf32>
    %c0_149 = arith.constant 0 : index
    %c0_150 = arith.constant 0 : index
    %227 = vector.load %arg9[%c0_149, %c0_150] : memref<1x128xf32, #tpu.memory_space<vmem>>, vector<1x128xf32>
    %228 = vector.broadcast %227 : vector<1x128xf32> to vector<16x128xf32>
    %229 = arith.addf %226, %228 : vector<16x128xf32>
    %230 = arith.negf %229 : vector<16x128xf32>
    %231 = math.exp %230 : vector<16x128xf32>
    %cst_151 = arith.constant 1.000000e+00 : f32
    %232 = vector.broadcast %cst_151 : f32 to vector<16x128xf32>
    %233 = arith.addf %232, %231 : vector<16x128xf32>
    %234 = arith.divf %232, %233 : vector<16x128xf32>
    %235 = arith.mulf %112, %234 : vector<16x128xf32>
    %236 = arith.addf %235, %1 : vector<16x128xf32>
    %c0_152 = arith.constant 0 : index
    %c0_153 = arith.constant 0 : index
    %c0_154 = arith.constant 0 : index
    %237 = vector.load %arg10[%c0_152, %c0_153, %c0_154] : memref<1x16x128xf32, #tpu.memory_space<vmem>>, vector<1x16x128xf32>
    %238 = vector.shape_cast %237 : vector<1x16x128xf32> to vector<16x128xf32>
    %239 = vector.shape_cast %236 : vector<16x128xf32> to vector<1x16x128xf32>
    tpu.vector_store %arg10[%c0_152, %c0_153, %c0_154], %239 {strides = array<i32>} : memref<1x16x128xf32, #tpu.memory_space<vmem>>, vector<1x16x128xf32>,
    return
  }
  func.func @transform_0(%arg0: i32) -> (i32, i32, i32) {
    %c0_i32 = arith.constant 0 : i32
    %c0_i32_0 = arith.constant 0 : i32
    %c0_i32_1 = arith.constant 0 : i32
    return %arg0, %c0_i32, %c0_i32_0 : i32, i32, i32
  }
  func.func @transform_1(%arg0: i32) -> (i32, i32, i32) {
    %c0_i32 = arith.constant 0 : i32
    %c0_i32_0 = arith.constant 0 : i32
    %c0_i32_1 = arith.constant 0 : i32
    %c0_i32_2 = arith.constant 0 : i32
    return %c0_i32, %c0_i32_0, %c0_i32_1 : i32, i32, i32
  }
  func.func @transform_2(%arg0: i32) -> (i32, i32, i32) {
    %c0_i32 = arith.constant 0 : i32
    %c0_i32_0 = arith.constant 0 : i32
    %c0_i32_1 = arith.constant 0 : i32
    %c0_i32_2 = arith.constant 0 : i32
    return %c0_i32, %c0_i32_0, %c0_i32_1 : i32, i32, i32
  }
  func.func @transform_3(%arg0: i32) -> (i32, i32, i32) {
    %c0_i32 = arith.constant 0 : i32
    %c0_i32_0 = arith.constant 0 : i32
    %c0_i32_1 = arith.constant 0 : i32
    %c0_i32_2 = arith.constant 0 : i32
    return %c0_i32, %c0_i32_0, %c0_i32_1 : i32, i32, i32
  }
  func.func @transform_4(%arg0: i32) -> (i32, i32, i32) {
    %c0_i32 = arith.constant 0 : i32
    %c0_i32_0 = arith.constant 0 : i32
    %c0_i32_1 = arith.constant 0 : i32
    %c0_i32_2 = arith.constant 0 : i32
    return %c0_i32, %c0_i32_0, %c0_i32_1 : i32, i32, i32
  }
  func.func @transform_5(%arg0: i32) -> (i32, i32, i32) {
    %c0_i32 = arith.constant 0 : i32
    %c0_i32_0 = arith.constant 0 : i32
    %c0_i32_1 = arith.constant 0 : i32
    %c0_i32_2 = arith.constant 0 : i32
    return %c0_i32, %c0_i32_0, %c0_i32_1 : i32, i32, i32
  }
  func.func @transform_6(%arg0: i32) -> (i32, i32, i32) {
    %c0_i32 = arith.constant 0 : i32
    %c0_i32_0 = arith.constant 0 : i32
    %c0_i32_1 = arith.constant 0 : i32
    %c0_i32_2 = arith.constant 0 : i32
    return %c0_i32, %c0_i32_0, %c0_i32_1 : i32, i32, i32
  }
  func.func @transform_7(%arg0: i32) -> (i32, i32) {
    %c0_i32 = arith.constant 0 : i32
    %c0_i32_0 = arith.constant 0 : i32
    %c0_i32_1 = arith.constant 0 : i32
    return %c0_i32, %c0_i32_0 : i32, i32
  }
  func.func @transform_8(%arg0: i32) -> (i32, i32) {
    %c0_i32 = arith.constant 0 : i32
    %c0_i32_0 = arith.constant 0 : i32
    %c0_i32_1 = arith.constant 0 : i32
    return %c0_i32, %c0_i32_0 : i32, i32
  }
  func.func @transform_9(%arg0: i32) -> (i32, i32, i32) {
    %c0_i32 = arith.constant 0 : i32
    %c0_i32_0 = arith.constant 0 : i32
    %c0_i32_1 = arith.constant 0 : i32
    return %arg0, %c0_i32, %c0_i32_0 : i32, i32, i32
  }
}

</mosaic_0001>

<bundles_post_ra>
// kernel: tpu_custom_call.1
= control target key start
LH: loop header
LB: loop body
LE: loop exit
PB: predicated region body
PF: predicated region fallthrough
CT: control target
= control target key end

     0   :  { %14 = vsyncpa [#allocation3], 0  ;;  %s4449_s0 = inlined_call_operand.vmem [shape: f32[2,16,128], index: 0, kind: input, shape index: {}]   ;;  %s4450_s1 = inlined_call_operand.vmem [shape: bf16[6,128,64], index: 1, kind: input, shape index: {}]   ;;  %s4451_s2 = inlined_call_operand.vmem [shape: f32[6,1,64], index: 2, kind: input, shape index: {}]   ;;  %s4452_s3 = inlined_call_operand.vmem [shape: bf16[6,192,64], index: 3, kind: input, shape index: {}]   ;;  %s4453_s4 = inlined_call_operand.vmem [shape: f32[6,1,64], index: 4, kind: input, shape index: {}]   ;;  %s4454_s5 = inlined_call_operand.vmem [shape: bf16[6,64,128], index: 5, kind: input, shape index: {}]   ;;  %s4455_s6 = inlined_call_operand.vmem [shape: f32[6,1,128], index: 6, kind: input, shape index: {}]   ;;  %s4456_s7 = inlined_call_operand.vmem [shape: bf16[128,128], index: 7, kind: input, shape index: {}]   ;;  %s4457_s8 = inlined_call_operand.vmem [shape: f32[1,128], index: 8, kind: input, shape index: {}]   ;;  %s4458_s9 = inlined_call_operand.hbm [shape: f32[2,16,128], index: 9, kind: output, shape index: {}]  }
   0x1   :  { %16 = vsyncpa [#allocation3 + $0x1], 0  ;;  %s3693_s30 = smov 0   ;;  %s3695_s10 = smov 0  }
   0x2   :  { %s3697_s11 = smov 0   ;;  %s3699_s12 = smov 0  }
   0x3 LB: > { %s3714_s13 = sadd.s32 4294967295, %s3638_s12   ;;  %s2432_s14 = sadd.s32 4294967294, %s3638_s12   ;;  %s3638_s12 = sphi %s3699_s12, %s4464_s12   ;;  %s3634_s11 = sphi %s3697_s11, %s4463_s11   ;;  %s3630_s10 = sphi %s3695_s10, %s4462_s10   ;;  %s3626_s30 = sphi %s3693_s30, %s4461_s30  }
   0x4   : > { %s3718_s15 = sadd.s32 1, %s3638_s12   ;;  %s223_s16 = sadd.s32 1, %s3634_s11 }
   0x5   : > { %s220_s17 = ssub.s32 %s3638_s12, %s3718_s15  ;;  %p233_p0 = scmp.ne.s32.totalorder %s3634_s11, %s3630_s10 }
   0x6   : > { %p221_p1 = scmp.eq.s32.totalorder %s220_s17, 0  ;;  %p234_p2 = scmp.eq.s32.totalorder %s3714_s13, 1 }
   0x7   : > { %p239_p3 = scmp.ne.s32.totalorder %s3630_s10, %s3626_s30  ;;  %p240_p4 = scmp.eq.s32.totalorder %s2432_s14, 1 }
   0x8   : > { %s3729_s18 = scalar_select %p221_p1, %s3634_s11, %s223_s16  }
   0x9   : > { %p3731_p5 = por %p234_p2, %p233_p0  ;;  %p3735_p6 = por %p240_p4, %p239_p3 }
   0xa   : > { %p2435_p7 = scmp.ge.s32.totalorder %s3638_s12, 1  ;;  %p290_p8 = scmp.lt.s32.totalorder %s3638_s12, 3 }
   0xc   : > { %p291_p9 = pnand %p2435_p7, %p290_p8 }
   0xd   : > { %p326_p10 = scmp.lt.s32.totalorder (!%p291_p9), %s3714_s13, 1  ;;  %s3640_s17 = smov (!%p291_p9), 64  }
   0xe   : > { %294 = sbr.rel (%p291_p9) target bundleno = 3135 (0xc3f), region = 56 }
  0x13   : > { %v3329_v0 = vld [vmem:[%s4450_s1 + $0x38] sm:$0xff]  ;;  %v3328_v1 = vld [vmem:[%s4450_s1 + $0x30] sm:$0xff]  ;;  %v3327_v2 = vld [vmem:[%s4450_s1 + $0x28] sm:$0xff]  ;;  %s327_s16 = scalar_select %p326_p10, %s3714_s13, 1  ;;  %vm421_vm0 = vcmask 1040384   ;;  %vm444_vm1 = vcmask 1045504  }
  0x14   : > { %403 = vmatpush.bf16.msra.mxu0 %v3329_v0  ;;  %v3326_v3 = vld [vmem:[%s4450_s1 + $0x20] sm:$0xff]  ;;  %v3325_v4 = vld [vmem:[%s4450_s1 + $0x18] sm:$0xff]  ;;  %v3324_v5 = vld [vmem:[%s4450_s1 + $0x10] sm:$0xff]  ;;  %vm432_vm2 = vcmask 1046528   ;;  %vm452_vm3 = vcmask 523264  }
  0x15   : > { %s3321_s22 = sshll.u32 %s327_s16, 4  ;;  %v3323_v6 = vld [vmem:[%s4450_s1 + $0x8] sm:$0xff]  ;;  %v3322_v7 = vld [vmem:[%s4450_s1] sm:$0xff]  ;;  %v3341_v11 = vld [vmem:[%s4452_s3 + $0x58] sm:$0xff]  ;;  %s323_s16 = sand.u32 1, %s3630_s10  }
  0x16   : > { %s3767_s27 = scalar_lea.vmem %s4449_s0, %s3321_s22  ;;  %578 = vmatpush.bf16.msra.mxu2 %v3341_v11  ;;  %v3340_v12 = vld [vmem:[%s4452_s3 + $0x50] sm:$0xff]  ;;  %v3339_v13 = vld [vmem:[%s4452_s3 + $0x48] sm:$0xff]  ;;  %v3338_v14 = vld [vmem:[%s4452_s3 + $0x40] sm:$0xff]  ;;  %s2436_s21 = sshll.u32 %s323_s16, 4 }
  0x17   : > { %v3773_v8 = vld [vmem:[%s3767_s27] sm:$0xff]  ;;  %v3776_v9 = vld [vmem:[%s3767_s27 + $0x8] sm:$0xff]  ;;  %v3337_v15 = vld [vmem:[%s4452_s3 + $0x38] sm:$0xff]  ;;  %s3474_s22 = sshll.u32 %s3714_s13, 4  ;;  %s325_s25 = scalar_lea.vmem [#allocation2], %s2436_s21 }
  0x18   : > { %404 = vmatpush.bf16.msra.mxu0 %v3328_v1  ;;  %v3780_v10 = vpack.c.bf16 %v3776_v9, %v3773_v8  ;;  %560 = vmatpush.bf16.msra.mxu1 %v3337_v15  ;;  %v3336_v16 = vld [vmem:[%s4452_s3 + $0x30] sm:$0xff]  ;;  %v3335_v17 = vld [vmem:[%s4452_s3 + $0x28] sm:$0xff]  ;;  %v3547_v18 = vld [vmem:[%s4451_s2] ss:$0 sm:$0xff]  ;;  %s2366_s24 = scalar_lea.hbm %s4458_s9, %s3474_s22  ;;  %s2367_s13 = sshll.u32 %s325_s25, 4  ;;  %s2368_s13 = int_to_ptr.vmem [resolvable:$true] %s2367_s13 }
  0x19   : > { %v3334_v19 = vld [vmem:[%s4452_s3 + $0x20] sm:$0xff]  ;;  %v3333_v22 = vld [vmem:[%s4452_s3 + $0x18] sm:$0xff]  ;;  %v3332_v24 = vld [vmem:[%s4452_s3 + $0x10] sm:$0xff]  ;;  %s2369_s26 = sshll.u32 %s2366_s24, 4  ;;  %s2355_s28 = scalar_lea.sflag [#allocation3], %s323_s16  ;;  %s2370_s26 = int_to_ptr.hbm [resolvable:$true] %s2369_s26 }
  0x1a   : > { %579 = vmatpush.bf16.msra.mxu2 %v3340_v12  ;;  %v3331_v29 = vld [vmem:[%s4452_s3 + $0x8] sm:$0xff]  ;;  %v3330_v46 = vld [vmem:[%s4452_s3] sm:$0xff]  ;;  %v3345_v53 = vld [vmem:[%s4454_s5 + $0x18] sm:$0xff]  ;;  %s3590_s29 = sshra.s32 %s2370_s26, 4  ;;  %s3591_s29 = int_to_ptr.hbm [resolvable:$true] %s3590_s29 }
  0x1b   : > { %634 = vmatpush.bf16.msra.mxu3 %v3345_v53  ;;  %v3344_v54 = vld [vmem:[%s4454_s5 + $0x10] sm:$0xff]  ;;  %v3343_v55 = vld [vmem:[%s4454_s5 + $0x8] sm:$0xff]  ;;  %v3342_v56 = vld [vmem:[%s4454_s5] sm:$0xff]  ;;  %s3592_s14 = scalar_lea.hbm %s3591_s29, 16  ;;  %p3597_p0 = scmp.lt.s32.totalorder %s3591_s29, %s4458_s9 }
  0x1c   : > { %405 = vmatpush.bf16.msra.mxu0 %v3327_v2  ;;  %561 = vmatpush.bf16.msra.mxu1 %v3336_v16  ;;  %v3353_v57 = vld [vmem:[%s4450_s1 + $0x78] sm:$0xff]  ;;  %v3352_v58 = vld [vmem:[%s4450_s1 + $0x70] sm:$0xff]  ;;  %v3351_v59 = vld [vmem:[%s4450_s1 + $0x68] sm:$0xff]  ;;  %p3593_p11 = scmp.ne.s32.totalorder %s3591_s29, %s3592_s14 }
  0x1d   : > { %v3350_v60 = vld [vmem:[%s4450_s1 + $0x60] sm:$0xff]  ;;  %v3349_v12 = vld [vmem:[%s4450_s1 + $0x58] sm:$0xff] }
  0x1e   : > { %580 = vmatpush.bf16.msra.mxu2 %v3339_v13  ;;  %v3548_v63 = vld [vmem:[%s4453_s4] ss:$0 sm:$0xff]  ;;  %v3348_v13 = vld [vmem:[%s4450_s1 + $0x50] sm:$0xff]  ;;  %p3594_p12 = pnand %p3593_p11, %p3731_p5 }
  0x1f   : > { %635 = vmatpush.bf16.msra.mxu3 %v3344_v54  ;;  %v3346_v15 = vld [vmem:[%s4450_s1 + $0x40] sm:$0xff] }
  0x20   : > { %406 = vmatpush.bf16.msra.mxu0 %v3326_v3  ;;  %562 = vmatpush.bf16.msra.mxu1 %v3335_v17  ;;  %v3549_v17 = vld [vmem:[%s4455_s6] ss:$0 sm:$0xff]  ;;  %p3595_p13 = pneg %p3594_p12 }
  0x22   : > { %581 = vmatpush.bf16.msra.mxu2 %v3338_v14  ;;  %v3347_v14 = vld [vmem:[%s4450_s1 + $0x48] sm:$0xff] }
  0x23   : > { %636 = vmatpush.bf16.msra.mxu3 %v3343_v55 }
  0x24   : > { %407 = vmatpush.bf16.msra.mxu0 %v3325_v4  ;;  %563 = vmatpush.bf16.msra.mxu1 %v3334_v19 }
  0x26   : > { %719 = vmatpush.bf16.msrb.mxu2 %v3353_v57 }
  0x27   : > { %637 = vmatpush.bf16.msra.mxu3 %v3342_v56 }
  0x28   : > { %408 = vmatpush.bf16.msra.mxu0 %v3324_v5  ;;  %564 = vmatpush.bf16.msra.mxu1 %v3333_v22 }
  0x2a   : > { %720 = vmatpush.bf16.msrb.mxu2 %v3352_v58 }
  0x2c   : > { %409 = vmatpush.bf16.msra.mxu0 %v3323_v6  ;;  %565 = vmatpush.bf16.msra.mxu1 %v3332_v24 }
  0x2e   : > { %721 = vmatpush.bf16.msrb.mxu2 %v3351_v59 }
  0x30   : > { %410 = vmatpush.bf16.msra.mxu0 %v3322_v7  ;;  %566 = vmatpush.bf16.msra.mxu1 %v3331_v29  ;;  %v3362_v29 = vld [vmem:[%s4452_s3 + $0xa0] sm:$0xff] }
  0x32   : > { %722 = vmatpush.bf16.msrb.mxu2 %v3350_v60 }
  0x33   : > { %411 = vmatmul.bf16.vlgmr.msra.gmra.mxu0 %v3780_v10 }
  0x34   : > { %567 = vmatpush.bf16.msra.mxu1 %v3330_v46 }
  0x36   : > { %723 = vmatpush.bf16.msrb.mxu2 %v3349_v12  ;;  %v3376_v12 = vld [vmem:[%s4450_s1 + $0xb0] sm:$0xff] }
  0x3a   : > { %724 = vmatpush.bf16.msrb.mxu2 %v3348_v13  ;;  %v3375_v13 = vld [vmem:[%s4450_s1 + $0xa8] sm:$0xff] }
  0x3e   : > { %725 = vmatpush.bf16.msrb.mxu2 %v3347_v14  ;;  %v3374_v14 = vld [vmem:[%s4450_s1 + $0xa0] sm:$0xff] }
  0x42   : > { %726 = vmatpush.bf16.msrb.mxu2 %v3346_v15 }
  0xb0   : > { %v412_v20 = vpop.f32.mrf.mxu0 }
  0xb1   : > { %v413_v21 = vadd.f32 %v3547_v18, %v412_v20 }
  0xb3   : > { %v417_v23 = vmax.f32 %v413_v21, 0.0 }
  0xb5   : > { %v422_v25 = vrot.slane %v417_v23, 7 }
  0xb7   : > { %v428_v30 = vsel %vm421_vm0, 0.0, %v422_v25 }
  0xb8   : > { %v414_v26 = vpop.f32.mrf.mxu0  ;;  %v433_v32 = vrot.slane %v428_v30, 1  ;;  %v445_v33 = vrot.slane %v428_v30, 2 }
  0xb9   : > { %v415_v27 = vadd.f32 %v3547_v18, %v414_v26  ;;  %v3365_v26 = vld [vmem:[%s4452_s3 + $0xb8] sm:$0xff] }
  0xba   : > { %892 = vmatpush.bf16.msrb.mxu1 %v3365_v26 }
  0xbb   : > { %v418_v28 = vmax.f32 %v415_v27, 0.0  ;;  %v3364_v27 = vld [vmem:[%s4452_s3 + $0xb0] sm:$0xff] }
  0xbd   : > { %v423_v31 = vrot.slane %v418_v28, 7  ;;  %v3363_v28 = vld [vmem:[%s4452_s3 + $0xa8] sm:$0xff] }
  0xbe   : > { %893 = vmatpush.bf16.msrb.mxu1 %v3364_v27 }
  0xbf   : > { %v424_v34 = vsel %vm421_vm0, %v422_v25, %v423_v31  ;;  %v429_v35 = vsel %vm421_vm0, %v423_v31, 0.0  ;;  %v3360_v31 = vld [vmem:[%s4452_s3 + $0x90] sm:$0xff] }
  0xc0   : > { %v436_v36 = vrot.slane %v429_v35, 1  ;;  %v446_v37 = vrot.slane %v424_v34, 2  ;;  %v448_v38 = vrot.slane %v429_v35, 2  ;;  %v434_v39 = vrot.slane %v424_v34, 1 }
  0xc2   : > { %v447_v40 = vsel %vm444_vm1, %v445_v33, %v446_v37  ;;  %v449_v41 = vsel %vm444_vm1, %v446_v37, %v448_v38  ;;  %v435_v42 = vsel %vm432_vm2, %v433_v32, %v434_v39  ;;  %v437_v43 = vsel %vm432_vm2, %v434_v39, %v436_v36  ;;  %894 = vmatpush.bf16.msrb.mxu1 %v3363_v28  ;;  %v3359_v32 = vld [vmem:[%s4452_s3 + $0x88] sm:$0xff]  ;;  %v3550_v33 = vld [vmem:[%s4451_s2 + $0x1] ss:$0 sm:$0xff]  ;;  %v3357_v37 = vld [vmem:[%s4452_s3 + $0x78] sm:$0xff] }
  0xc3   : > { %v456_v44 = vpack.c.bf16 %v449_v41, %v447_v40  ;;  %v3517_v45 = vpack.i.bf16 %v437_v43, %v435_v42  ;;  %v3356_v39 = vld [vmem:[%s4452_s3 + $0x70] sm:$0xff] }
  0xc5   : > { %2519 = vmatmul.msk.bf16.vlgmr.msra.gmra.mxu2 %vm452_vm3, %v456_v44  ;;  %3518 = vrot.lane.b32.xlu0 %v3517_v45, %s3640_s17  ;;  %v3355_v44 = vld [vmem:[%s4452_s3 + $0x68] sm:$0xff] }
  0xc6   : > { %895 = vmatpush.bf16.msrb.mxu1 %v3362_v29 }
 0x137   : > { %v3519_v47 = vpop.permute.xlu0 %3518 }
 0x138   : > { %v3521_v48 = vunpack.i.h.bf16 %v3519_v47  ;;  %v3520_v49 = vunpack.i.l.bf16 %v3519_v47 }
 0x13a   : > { %v453_v50 = vsel %vm452_vm3, %v428_v30, %v3520_v49  ;;  %v454_v51 = vsel %vm452_vm3, %v424_v34, %v3521_v48  ;;  %v3361_v30 = vld [vmem:[%s4452_s3 + $0x98] sm:$0xff]  ;;  %v3358_v34 = vld [vmem:[%s4452_s3 + $0x80] sm:$0xff] }
 0x13b   : > { %v455_v52 = vpack.c.bf16 %v454_v51, %v453_v50  ;;  %874 = vmatpush.bf16.msrb.mxu3 %v3361_v30 }
 0x13d   : > { %568 = vmatmul.bf16.vlgmr.msra.gmra.mxu1 %v455_v52 }
 0x13f   : > { %875 = vmatpush.bf16.msrb.mxu3 %v3360_v31  ;;  %v3373_v31 = vld [vmem:[%s4450_s1 + $0x98] sm:$0xff] }
 0x143   : > { %876 = vmatpush.bf16.msrb.mxu3 %v3359_v32  ;;  %v3372_v32 = vld [vmem:[%s4450_s1 + $0x90] sm:$0xff] }
 0x147   : > { %877 = vmatpush.bf16.msrb.mxu3 %v3358_v34  ;;  %v3370_v34 = vld [vmem:[%s4450_s1 + $0x80] sm:$0xff] }
 0x148   : > { %v583_v61 = vpop.f32.mrf.mxu2 }
 0x14b   : > { %878 = vmatpush.bf16.msrb.mxu3 %v3357_v37 }
 0x14f   : > { %879 = vmatpush.bf16.msrb.mxu3 %v3356_v39 }
 0x150   : > { %v585_v4 = vpop.f32.mrf.mxu2 }
 0x153   : > { %880 = vmatpush.bf16.msrb.mxu3 %v3355_v44 }
 0x1ba   : > { %v569_v62 = vpop.f32.mrf.mxu1 }
 0x1bb   : > { %v570_v0 = vadd.f32 %v3548_v63, %v569_v62 }
 0x1bd   : > { %v584_v2 = vadd.f32 %v583_v61, %v570_v0  ;;  %v3354_v61 = vld [vmem:[%s4452_s3 + $0x60] sm:$0xff] }
 0x1be   : > { %881 = vmatpush.bf16.msrb.mxu3 %v3354_v61 }
 0x1bf   : > { %v588_v6 = vmax.f32 %v584_v2, 0.0 }
 0x1c2   : > { %v571_v1 = vpop.f32.mrf.mxu1 }
 0x1c3   : > { %v572_v3 = vadd.f32 %v3548_v63, %v571_v1 }
 0x1c5   : > { %v586_v5 = vadd.f32 %v585_v4, %v572_v3  ;;  %v3369_v4 = vld [vmem:[%s4454_s5 + $0x38] sm:$0xff] }
 0x1c6   : > { %950 = vmatpush.bf16.msra.mxu1 %v3369_v4 }
 0x1c7   : > { %v589_v7 = vmax.f32 %v586_v5, 0.0  ;;  %v3368_v5 = vld [vmem:[%s4454_s5 + $0x30] sm:$0xff] }
 0x1c9   : > { %v590_v11 = vpack.c.bf16 %v589_v7, %v588_v6  ;;  %v3367_v6 = vld [vmem:[%s4454_s5 + $0x28] sm:$0xff]  ;;  %v3366_v7 = vld [vmem:[%s4454_s5 + $0x20] sm:$0xff] }
 0x1ca   : > { %951 = vmatpush.bf16.msra.mxu1 %v3368_v5 }
 0x1cb   : > { %2536 = vmatmul.msk.bf16.vlgmr.msra.gmra.mxu3 %vm452_vm3, %v590_v11  ;;  %v3377_v11 = vld [vmem:[%s4450_s1 + $0xb8] sm:$0xff] }
 0x1cc   : > { %1035 = vmatpush.bf16.msrb.mxu0 %v3377_v11 }
 0x1ce   : > { %952 = vmatpush.bf16.msra.mxu1 %v3367_v6  ;;  %v3382_v6 = vld [vmem:[%s4452_s3 + $0xe0] sm:$0xff] }
 0x1d0   : > { %1036 = vmatpush.bf16.msrb.mxu0 %v3376_v12 }
 0x1d2   : > { %953 = vmatpush.bf16.msra.mxu1 %v3366_v7 }
 0x1d4   : > { %1037 = vmatpush.bf16.msrb.mxu0 %v3375_v13 }
 0x1d8   : > { %1038 = vmatpush.bf16.msrb.mxu0 %v3374_v14 }
 0x1dc   : > { %1039 = vmatpush.bf16.msrb.mxu0 %v3373_v31 }
 0x1e0   : > { %1040 = vmatpush.bf16.msrb.mxu0 %v3372_v32 }
 0x24e   : > { %v639_v16 = vpop.f32.mrf.mxu3 }
 0x24f   : > { %v640_v18 = vadd.f32 %v3549_v17, %v639_v16 }
 0x251   : > { %v3877_v20 = vadd.f32 %v640_v18, %v3773_v8 }
 0x253   : > { %v646_v23 = vmax.f32 %v3877_v20, 0.0  ;;  %v3387_v20 = vld [vmem:[%s4452_s3 + $0x108] sm:$0xff] }
 0x256   : > { %v641_v19 = vpop.f32.mrf.mxu3 }
 0x257   : > { %v642_v21 = vadd.f32 %v3549_v17, %v641_v19  ;;  %v3551_v17 = vld [vmem:[%s4453_s4 + $0x1] ss:$0 sm:$0xff] }
 0x259   : > { %v3880_v22 = vadd.f32 %v642_v21, %v3776_v9 }
 0x25b   : > { %v647_v24 = vmax.f32 %v3880_v22, 0.0  ;;  %v3386_v22 = vld [vmem:[%s4452_s3 + $0x100] sm:$0xff] }
 0x25d   : > { %v648_v25 = vpack.c.bf16 %v647_v24, %v646_v23 }
 0x25f   : > { %727 = vmatmul.bf16.vlgmr.msrb.gmra.mxu2 %v648_v25 }
 0x2e2   : > { %v728_v35 = vpop.f32.mrf.mxu2 }
 0x2e3   : > { %v729_v36 = vadd.f32 %v3550_v33, %v728_v35  ;;  %v3389_v35 = vld [vmem:[%s4452_s3 + $0x118] sm:$0xff] }
 0x2e4   : > { %1208 = vmatpush.bf16.msra.mxu2 %v3389_v35  ;;  %v3411_v35 = vld [vmem:[%s4452_s3 + $0x168] sm:$0xff] }
 0x2e5   : > { %v733_v38 = vmax.f32 %v729_v36, 0.0  ;;  %v3388_v36 = vld [vmem:[%s4452_s3 + $0x110] sm:$0xff] }
 0x2e7   : > { %v737_v40 = vrot.slane %v733_v38, 7  ;;  %v3552_v38 = vld [vmem:[%s4455_s6 + $0x1] ss:$0 sm:$0xff] }
 0x2e8   : > { %1209 = vmatpush.bf16.msra.mxu2 %v3388_v36 }
 0x2e9   : > { %v743_v45 = vsel %vm421_vm0, 0.0, %v737_v40 }
 0x2ea   : > { %v730_v41 = vpop.f32.mrf.mxu2  ;;  %v747_v47 = vrot.slane %v743_v45, 1  ;;  %v758_v48 = vrot.slane %v743_v45, 2 }
 0x2eb   : > { %v731_v42 = vadd.f32 %v3550_v33, %v730_v41  ;;  %v3371_v33 = vld [vmem:[%s4450_s1 + $0x88] sm:$0xff] }
 0x2ec   : > { %1041 = vmatpush.bf16.msrb.mxu0 %v3371_v33  ;;  %1210 = vmatpush.bf16.msra.mxu2 %v3387_v20 }
 0x2ed   : > { %v734_v43 = vmax.f32 %v731_v42, 0.0 }
 0x2ef   : > { %v738_v46 = vrot.slane %v734_v43, 7 }
 0x2f0   : > { %1042 = vmatpush.bf16.msrb.mxu0 %v3370_v34  ;;  %1211 = vmatpush.bf16.msra.mxu2 %v3386_v22  ;;  %v3413_v34 = vld [vmem:[%s4452_s3 + $0x178] sm:$0xff] }
 0x2f1   : > { %v739_v49 = vsel %vm421_vm0, %v737_v40, %v738_v46  ;;  %v744_v50 = vsel %vm421_vm0, %v738_v46, 0.0 }
 0x2f2   : > { %v748_v51 = vrot.slane %v739_v49, 1  ;;  %v750_v52 = vrot.slane %v744_v50, 1  ;;  %v759_v53 = vrot.slane %v739_v49, 2  ;;  %v761_v54 = vrot.slane %v744_v50, 2  ;;  %v3396_v50 = vld [vmem:[%s4450_s1 + $0xd0] sm:$0xff] }
 0x2f4   : > { %v760_v55 = vsel %vm444_vm1, %v758_v48, %v759_v53  ;;  %v762_v56 = vsel %vm444_vm1, %v759_v53, %v761_v54  ;;  %v749_v57 = vsel %vm432_vm2, %v747_v47, %v748_v51  ;;  %v751_v58 = vsel %vm432_vm2, %v748_v51, %v750_v52  ;;  %v3399_v47 = vld [vmem:[%s4450_s1 + $0xe8] sm:$0xff]  ;;  %v3398_v48 = vld [vmem:[%s4450_s1 + $0xe0] sm:$0xff]  ;;  %1523 = vmatpush.bf16.msra.mxu0 %v3413_v34  ;;  %v3417_v34 = vld [vmem:[%s4454_s5 + $0x78] sm:$0xff] }
 0x2f5   : > { %v768_v59 = vpack.c.bf16 %v762_v56, %v760_v55  ;;  %v3522_v60 = vpack.i.bf16 %v751_v58, %v749_v57  ;;  %v3395_v51 = vld [vmem:[%s4450_s1 + $0xc8] sm:$0xff]  ;;  %v3553_v52 = vld [vmem:[%s4451_s2 + $0x2] ss:$0 sm:$0xff]  ;;  %v3385_v57 = vld [vmem:[%s4452_s3 + $0xf8] sm:$0xff] }
 0x2f6   : > { %v3394_v53 = vld [vmem:[%s4450_s1 + $0xc0] sm:$0xff]  ;;  %v3384_v58 = vld [vmem:[%s4452_s3 + $0xf0] sm:$0xff] }
 0x2f7   : > { %2659 = vmatmul.msk.bf16.vlgmr.msrb.gmra.mxu1 %vm452_vm3, %v768_v59  ;;  %3523 = vrot.lane.b32.xlu0 %v3522_v60, %s3640_s17 }
 0x2f8   : > { %1190 = vmatpush.bf16.msrb.mxu1 %v3385_v57 }
 0x2fc   : > { %1191 = vmatpush.bf16.msrb.mxu1 %v3384_v58 }
 0x369   : > { %v3524_v62 = vpop.permute.xlu0 %3523 }
 0x36a   : > { %v3526_v63 = vunpack.i.h.bf16 %v3524_v62  ;;  %v3525_v0 = vunpack.i.l.bf16 %v3524_v62 }
 0x36c   : > { %v765_v1 = vsel %vm452_vm3, %v743_v45, %v3525_v0  ;;  %v766_v2 = vsel %vm452_vm3, %v739_v49, %v3526_v63  ;;  %v3397_v49 = vld [vmem:[%s4450_s1 + $0xd8] sm:$0xff]  ;;  %v3383_v63 = vld [vmem:[%s4452_s3 + $0xe8] sm:$0xff] }
 0x36d   : > { %v767_v3 = vpack.c.bf16 %v766_v2, %v765_v1  ;;  %1192 = vmatpush.bf16.msrb.mxu1 %v3383_v63 }
 0x36f   : > { %882 = vmatmul.bf16.vlgmr.msrb.gmra.mxu3 %v767_v3 }
 0x371   : > { %1193 = vmatpush.bf16.msrb.mxu1 %v3382_v6  ;;  %v3406_v6 = vld [vmem:[%s4452_s3 + $0x140] sm:$0xff] }
 0x374   : > { %v897_v15 = vpop.f32.mrf.mxu1 }
 0x37c   : > { %v899_v26 = vpop.f32.mrf.mxu1 }
 0x3f2   : > { %v883_v16 = vpop.f32.mrf.mxu3 }
 0x3f3   : > { %v884_v18 = vadd.f32 %v3551_v17, %v883_v16 }
 0x3f5   : > { %v898_v21 = vadd.f32 %v897_v15, %v884_v18 }
 0x3f7   : > { %v902_v28 = vmax.f32 %v898_v21, 0.0  ;;  %v3381_v21 = vld [vmem:[%s4452_s3 + $0xd8] sm:$0xff] }
 0x3f8   : > { %1194 = vmatpush.bf16.msrb.mxu1 %v3381_v21 }
 0x3fa   : > { %v885_v19 = vpop.f32.mrf.mxu3 }
 0x3fb   : > { %v886_v25 = vadd.f32 %v3551_v17, %v885_v19 }
 0x3fd   : > { %v900_v27 = vadd.f32 %v899_v26, %v886_v25  ;;  %v3380_v25 = vld [vmem:[%s4452_s3 + $0xd0] sm:$0xff]  ;;  %v3379_v26 = vld [vmem:[%s4452_s3 + $0xc8] sm:$0xff] }
 0x3fe   : > { %1195 = vmatpush.bf16.msrb.mxu1 %v3380_v25 }
 0x3ff   : > { %v903_v29 = vmax.f32 %v900_v27, 0.0  ;;  %v3378_v27 = vld [vmem:[%s4452_s3 + $0xc0] sm:$0xff] }
 0x401   : > { %v904_v30 = vpack.c.bf16 %v903_v29, %v902_v28 }
 0x402   : > { %1196 = vmatpush.bf16.msrb.mxu1 %v3379_v26 }
 0x403   : > { %2685 = vmatmul.msk.bf16.vlgmr.msra.gmra.mxu1 %vm452_vm3, %v904_v30 }
 0x406   : > { %1197 = vmatpush.bf16.msrb.mxu1 %v3378_v27 }
 0x40a   : > { %1581 = vmatpush.bf16.msra.mxu1 %v3417_v34 }
 0x480   : > { %v955_v37 = vpop.f32.mrf.mxu1 }
 0x481   : > { %v956_v39 = vadd.f32 %v3552_v38, %v955_v37  ;;  %v3410_v37 = vld [vmem:[%s4452_s3 + $0x160] sm:$0xff] }
 0x483   : > { %v3989_v41 = vadd.f32 %v956_v39, %v646_v23  ;;  %v3401_v23 = vld [vmem:[%s4450_s1 + $0xf8] sm:$0xff] }
 0x484   : > { %1350 = vmatpush.bf16.msrb.mxu2 %v3401_v23 }
 0x485   : > { %v962_v44 = vmax.f32 %v3989_v41, 0.0 }
 0x488   : > { %v957_v40 = vpop.f32.mrf.mxu1 }
 0x489   : > { %v958_v42 = vadd.f32 %v3552_v38, %v957_v40  ;;  %v3393_v38 = vld [vmem:[%s4454_s5 + $0x58] sm:$0xff]  ;;  %v3554_v40 = vld [vmem:[%s4451_s2 + $0x3] ss:$0 sm:$0xff] }
 0x48a   : > { %1266 = vmatpush.bf16.msra.mxu3 %v3393_v38  ;;  %v3425_v38 = vld [vmem:[%s4450_s1 + $0x138] sm:$0xff] }
 0x48b   : > { %v3993_v43 = vadd.f32 %v958_v42, %v647_v24  ;;  %v3400_v24 = vld [vmem:[%s4450_s1 + $0xf0] sm:$0xff] }
 0x48c   : > { %1351 = vmatpush.bf16.msrb.mxu2 %v3400_v24 }
 0x48d   : > { %v963_v45 = vmax.f32 %v3993_v43, 0.0 }
 0x48f   : > { %v964_v46 = vpack.c.bf16 %v963_v45, %v962_v44 }
 0x490   : > { %1352 = vmatpush.bf16.msrb.mxu2 %v3399_v47 }
 0x491   : > { %1043 = vmatmul.bf16.vlgmr.msrb.gmra.mxu0 %v964_v46 }
 0x494   : > { %1353 = vmatpush.bf16.msrb.mxu2 %v3398_v48 }
 0x498   : > { %1354 = vmatpush.bf16.msrb.mxu2 %v3397_v49 }
 0x49c   : > { %1355 = vmatpush.bf16.msrb.mxu2 %v3396_v50 }
 0x4a0   : > { %1356 = vmatpush.bf16.msrb.mxu2 %v3395_v51 }
 0x4a4   : > { %1357 = vmatpush.bf16.msrb.mxu2 %v3394_v53 }
 0x50e   : > { %v1044_v54 = vpop.f32.mrf.mxu0 }
 0x50f   : > { %v1045_v55 = vadd.f32 %v3553_v52, %v1044_v54 }
 0x511   : > { %v1049_v56 = vmax.f32 %v1045_v55, 0.0 }
 0x513   : > { %v1053_v59 = vrot.slane %v1049_v56, 7 }
 0x515   : > { %v1059_v0 = vsel %vm421_vm0, 0.0, %v1053_v59 }
 0x516   : > { %v1046_v60 = vpop.f32.mrf.mxu0  ;;  %v1063_v2 = vrot.slane %v1059_v0, 1  ;;  %v1074_v3 = vrot.slane %v1059_v0, 2 }
 0x517   : > { %v1047_v61 = vadd.f32 %v3553_v52, %v1046_v60 }
 0x519   : > { %v1050_v62 = vmax.f32 %v1047_v61, 0.0 }
 0x51b   : > { %v1054_v1 = vrot.slane %v1050_v62, 7 }
 0x51d   : > { %v1055_v4 = vsel %vm421_vm0, %v1053_v59, %v1054_v1  ;;  %v1060_v5 = vsel %vm421_vm0, %v1054_v1, 0.0  ;;  %v3391_v1 = vld [vmem:[%s4454_s5 + $0x48] sm:$0xff] }
 0x51e   : > { %v1066_v7 = vrot.slane %v1060_v5, 1  ;;  %v1075_v11 = vrot.slane %v1055_v4, 2  ;;  %v1077_v12 = vrot.slane %v1060_v5, 2  ;;  %v1064_v13 = vrot.slane %v1055_v4, 1  ;;  %v3407_v5 = vld [vmem:[%s4452_s3 + $0x148] sm:$0xff] }
 0x520   : > { %v1076_v14 = vsel %vm444_vm1, %v1074_v3, %v1075_v11  ;;  %v1078_v15 = vsel %vm444_vm1, %v1075_v11, %v1077_v12  ;;  %v1065_v16 = vsel %vm432_vm2, %v1063_v2, %v1064_v13  ;;  %v1067_v17 = vsel %vm432_vm2, %v1064_v13, %v1066_v7  ;;  %v3390_v2 = vld [vmem:[%s4454_s5 + $0x40] sm:$0xff]  ;;  %v3409_v3 = vld [vmem:[%s4452_s3 + $0x158] sm:$0xff]  ;;  %v3404_v11 = vld [vmem:[%s4452_s3 + $0x130] sm:$0xff] }
 0x521   : > { %v1084_v18 = vpack.c.bf16 %v1078_v15, %v1076_v14  ;;  %v3527_v19 = vpack.i.bf16 %v1067_v17, %v1065_v16  ;;  %v3405_v7 = vld [vmem:[%s4452_s3 + $0x138] sm:$0xff]  ;;  %v3403_v13 = vld [vmem:[%s4452_s3 + $0x128] sm:$0xff]  ;;  %v3555_v14 = vld [vmem:[%s4453_s4 + $0x2] ss:$0 sm:$0xff] }
 0x522   : > { %v3402_v16 = vld [vmem:[%s4452_s3 + $0x120] sm:$0xff] }
 0x523   : > { %2808 = vmatmul.msk.bf16.vlgmr.msra.gmra.mxu2 %vm452_vm3, %v1084_v18  ;;  %3528 = vrot.lane.b32.xlu1 %v3527_v19, %s3640_s17 }
 0x533   : > { %1358 = vmatmul.bf16.vlgmr.msrb.gmra.mxu2 %v3780_v10  ;;  %v3412_v10 = vld [vmem:[%s4452_s3 + $0x170] sm:$0xff] }
 0x534   : > { %1524 = vmatpush.bf16.msra.mxu0 %v3412_v10  ;;  %v3416_v10 = vld [vmem:[%s4454_s5 + $0x70] sm:$0xff] }
 0x535   : > { %1582 = vmatpush.bf16.msra.mxu1 %v3416_v10 }
 0x538   : > { %1525 = vmatpush.bf16.msra.mxu0 %v3411_v35  ;;  %v3415_v35 = vld [vmem:[%s4454_s5 + $0x68] sm:$0xff] }
 0x539   : > { %1583 = vmatpush.bf16.msra.mxu1 %v3415_v35 }
 0x53c   : > { %1526 = vmatpush.bf16.msra.mxu0 %v3410_v37 }
 0x540   : > { %1666 = vmatpush.bf16.msrb.mxu0 %v3425_v38 }
 0x595   : > { %v3529_v28 = vpop.permute.xlu1 %3528 }
 0x596   : > { %v3531_v29 = vunpack.i.h.bf16 %v3529_v28  ;;  %v3530_v30 = vunpack.i.l.bf16 %v3529_v28 }
 0x598   : > { %v1082_v31 = vsel %vm452_vm3, %v1055_v4, %v3531_v29  ;;  %v1081_v32 = vsel %vm452_vm3, %v1059_v0, %v3530_v30  ;;  %v3392_v0 = vld [vmem:[%s4454_s5 + $0x50] sm:$0xff] }
 0x599   : > { %v1083_v33 = vpack.c.bf16 %v1082_v31, %v1081_v32  ;;  %1267 = vmatpush.bf16.msra.mxu3 %v3392_v0  ;;  %v3408_v4 = vld [vmem:[%s4452_s3 + $0x150] sm:$0xff] }
 0x59b   : > { %1198 = vmatmul.bf16.vlgmr.msrb.gmra.mxu1 %v1083_v33 }
 0x59d   : > { %1268 = vmatpush.bf16.msra.mxu3 %v3391_v1 }
 0x5a1   : > { %1269 = vmatpush.bf16.msra.mxu3 %v3390_v2 }
 0x5a5   : > { %1505 = vmatpush.bf16.msrb.mxu3 %v3409_v3 }
 0x5a6   : > { %v1213_v36 = vpop.f32.mrf.mxu2 }
 0x5a9   : > { %1506 = vmatpush.bf16.msrb.mxu3 %v3408_v4 }
 0x5ad   : > { %1507 = vmatpush.bf16.msrb.mxu3 %v3407_v5  ;;  %v3437_v5 = vld [vmem:[%s4452_s3 + $0x1d8] sm:$0xff] }
 0x5ae   : > { %v1215_v39 = vpop.f32.mrf.mxu2  ;;  %1839 = vmatpush.bf16.msra.mxu2 %v3437_v5 }
 0x5b1   : > { %1508 = vmatpush.bf16.msrb.mxu3 %v3406_v6  ;;  %v3434_v6 = vld [vmem:[%s4452_s3 + $0x1c0] sm:$0xff] }
 0x5b5   : > { %1509 = vmatpush.bf16.msrb.mxu3 %v3405_v7  ;;  %v3433_v7 = vld [vmem:[%s4452_s3 + $0x1b8] sm:$0xff] }
 0x5b6   : > { %v1359_v42 = vpop.f32.mrf.mxu2 }
 0x5b7   : > { %v1360_v46 = vadd.f32 %v3554_v40, %v1359_v42 }
 0x5b9   : > { %v1364_v20 = vmax.f32 %v1360_v46, 0.0  ;;  %1510 = vmatpush.bf16.msrb.mxu3 %v3404_v11  ;;  %v3422_v46 = vld [vmem:[%s4450_s1 + $0x120] sm:$0xff]  ;;  %v3432_v11 = vld [vmem:[%s4452_s3 + $0x1b0] sm:$0xff] }
 0x5bb   : > { %v1368_v22 = vrot.slane %v1364_v20, 7 }
 0x5bd   : > { %v1374_v48 = vsel %vm421_vm0, 0.0, %v1368_v22  ;;  %1511 = vmatpush.bf16.msrb.mxu3 %v3403_v13  ;;  %v3559_v13 = vld [vmem:[%s4451_s2 + $0x4] ss:$0 sm:$0xff] }
 0x5be   : > { %v1361_v23 = vpop.f32.mrf.mxu2  ;;  %v1378_v50 = vrot.slane %v1374_v48, 1  ;;  %v1389_v51 = vrot.slane %v1374_v48, 2 }
 0x5bf   : > { %v1362_v24 = vadd.f32 %v3554_v40, %v1361_v23  ;;  %v3423_v40 = vld [vmem:[%s4450_s1 + $0x128] sm:$0xff]  ;;  %v3557_v23 = vld [vmem:[%s4453_s4 + $0x3] ss:$0 sm:$0xff] }
 0x5c1   : > { %v1365_v47 = vmax.f32 %v1362_v24, 0.0  ;;  %1512 = vmatpush.bf16.msrb.mxu3 %v3402_v16 }
 0x5c3   : > { %v1369_v49 = vrot.slane %v1365_v47, 7 }
 0x5c5   : > { %v1370_v52 = vsel %vm421_vm0, %v1368_v22, %v1369_v49  ;;  %v1375_v53 = vsel %vm421_vm0, %v1369_v49, 0.0 }
 0x5c6   : > { %v1379_v54 = vrot.slane %v1370_v52, 1  ;;  %v1381_v55 = vrot.slane %v1375_v53, 1  ;;  %v1390_v56 = vrot.slane %v1370_v52, 2  ;;  %v1392_v57 = vrot.slane %v1375_v53, 2 }
 0x5c8   : > { %v1391_v58 = vsel %vm444_vm1, %v1389_v51, %v1390_v56  ;;  %v1393_v59 = vsel %vm444_vm1, %v1390_v56, %v1392_v57  ;;  %v1380_v60 = vsel %vm432_vm2, %v1378_v50, %v1379_v54  ;;  %v1382_v61 = vsel %vm432_vm2, %v1379_v54, %v1381_v55  ;;  %v3421_v55 = vld [vmem:[%s4450_s1 + $0x118] sm:$0xff]  ;;  %v3420_v56 = vld [vmem:[%s4450_s1 + $0x110] sm:$0xff]  ;;  %v3419_v57 = vld [vmem:[%s4450_s1 + $0x108] sm:$0xff] }
 0x5c9   : > { %v1399_v62 = vpack.c.bf16 %v1393_v59, %v1391_v58  ;;  %v3532_v63 = vpack.i.bf16 %v1382_v61, %v1380_v60  ;;  %v3418_v58 = vld [vmem:[%s4450_s1 + $0x100] sm:$0xff] }
 0x5ca   : > { %v3558_v60 = vld [vmem:[%s4455_s6 + $0x3] ss:$0 sm:$0xff] }
 0x5cb   : > { %2957 = vmatmul.msk.bf16.vlgmr.msra.gmra.mxu0 %vm452_vm3, %v1399_v62  ;;  %3533 = vrot.lane.b32.xlu1 %v3532_v63, %s3640_s17 }
 0x618   : > { %v1199_v12 = vpop.f32.mrf.mxu1 }
 0x619   : > { %v1200_v15 = vadd.f32 %v3555_v14, %v1199_v12  ;;  %v3431_v12 = vld [vmem:[%s4452_s3 + $0x1a8] sm:$0xff] }
 0x61b   : > { %v1214_v18 = vadd.f32 %v1213_v36, %v1200_v15  ;;  %v3414_v36 = vld [vmem:[%s4454_s5 + $0x60] sm:$0xff] }
 0x61c   : > { %1584 = vmatpush.bf16.msra.mxu1 %v3414_v36 }
 0x61d   : > { %v1218_v25 = vmax.f32 %v1214_v18, 0.0 }
 0x620   : > { %v1201_v17 = vpop.f32.mrf.mxu1  ;;  %1821 = vmatpush.bf16.msrb.mxu1 %v3433_v7 }
 0x621   : > { %v1202_v19 = vadd.f32 %v3555_v14, %v1201_v17  ;;  %v3430_v14 = vld [vmem:[%s4452_s3 + $0x1a0] sm:$0xff]  ;;  %v3429_v17 = vld [vmem:[%s4452_s3 + $0x198] sm:$0xff] }
 0x623   : > { %v1216_v21 = vadd.f32 %v1215_v39, %v1202_v19  ;;  %v3424_v39 = vld [vmem:[%s4450_s1 + $0x130] sm:$0xff] }
 0x624   : > { %1667 = vmatpush.bf16.msrb.mxu0 %v3424_v39  ;;  %1822 = vmatpush.bf16.msrb.mxu1 %v3432_v11  ;;  %v3428_v19 = vld [vmem:[%s4452_s3 + $0x190] sm:$0xff] }
 0x625   : > { %v1219_v26 = vmax.f32 %v1216_v21, 0.0 }
 0x627   : > { %v1220_v27 = vpack.c.bf16 %v1219_v26, %v1218_v25 }
 0x628   : > { %1668 = vmatpush.bf16.msrb.mxu0 %v3423_v40  ;;  %1823 = vmatpush.bf16.msrb.mxu1 %v3431_v12 }
 0x629   : > { %2834 = vmatmul.msk.bf16.vlgmr.msra.gmra.mxu3 %vm452_vm3, %v1220_v27 }
 0x62c   : > { %1669 = vmatpush.bf16.msrb.mxu0 %v3422_v46  ;;  %1824 = vmatpush.bf16.msrb.mxu1 %v3430_v14  ;;  %v3445_v14 = vld [vmem:[%s4450_s1 + $0x158] sm:$0xff] }
 0x630   : > { %1670 = vmatpush.bf16.msrb.mxu0 %v3421_v55  ;;  %1825 = vmatpush.bf16.msrb.mxu1 %v3429_v17  ;;  %v3439_v55 = vld [vmem:[%s4454_s5 + $0x88] sm:$0xff]  ;;  %v3442_v17 = vld [vmem:[%s4450_s1 + $0x140] sm:$0xff] }
 0x634   : > { %1671 = vmatpush.bf16.msrb.mxu0 %v3420_v56  ;;  %1826 = vmatpush.bf16.msrb.mxu1 %v3428_v19  ;;  %v3438_v56 = vld [vmem:[%s4454_s5 + $0x80] sm:$0xff] }
 0x635   : > { %v3561_v19 = vld [vmem:[%s4455_s6 + $0x4] ss:$0 sm:$0xff] }
 0x638   : > { %1672 = vmatpush.bf16.msrb.mxu0 %v3419_v57  ;;  %v3449_v57 = vld [vmem:[%s4450_s1 + $0x178] sm:$0xff] }
 0x63c   : > { %1673 = vmatpush.bf16.msrb.mxu0 %v3418_v58  ;;  %v3448_v58 = vld [vmem:[%s4450_s1 + $0x170] sm:$0xff] }
 0x63d   : > { %v3534_v28 = vpop.permute.xlu1 %3533 }
 0x63e   : > { %v3536_v29 = vunpack.i.h.bf16 %v3534_v28  ;;  %v3535_v30 = vunpack.i.l.bf16 %v3534_v28  ;;  %v3427_v28 = vld [vmem:[%s4452_s3 + $0x188] sm:$0xff] }
 0x63f   : > { %1827 = vmatpush.bf16.msrb.mxu1 %v3427_v28 }
 0x640   : > { %v1397_v31 = vsel %vm452_vm3, %v1370_v52, %v3536_v29  ;;  %v1396_v32 = vsel %vm452_vm3, %v1374_v48, %v3535_v30 }
 0x641   : > { %v1398_v33 = vpack.c.bf16 %v1397_v31, %v1396_v32 }
 0x643   : > { %1513 = vmatmul.bf16.vlgmr.msrb.gmra.mxu3 %v1398_v33 }
 0x648   : > { %v1528_v20 = vpop.f32.mrf.mxu0 }
 0x650   : > { %v1530_v50 = vpop.f32.mrf.mxu0 }
 0x6ac   : > { %v4148_v37 = vpop.f32.mrf.mxu3 }
 0x6b4   : > { %v4159_v42 = vpop.f32.mrf.mxu3 }
 0x6c6   : > { %v1514_v22 = vpop.f32.mrf.mxu3 }
 0x6c7   : > { %v1515_v24 = vadd.f32 %v3557_v23, %v1514_v22 }
 0x6c9   : > { %v1529_v48 = vadd.f32 %v1528_v20, %v1515_v24  ;;  %v3426_v24 = vld [vmem:[%s4452_s3 + $0x180] sm:$0xff] }
 0x6ca   : > { %1828 = vmatpush.bf16.msrb.mxu1 %v3426_v24 }
 0x6cb   : > { %v1533_v52 = vmax.f32 %v1529_v48, 0.0 }
 0x6ce   : > { %v1516_v47 = vpop.f32.mrf.mxu3 }
 0x6cf   : > { %v1517_v49 = vadd.f32 %v3557_v23, %v1516_v47 }
 0x6d1   : > { %v1531_v51 = vadd.f32 %v1530_v50, %v1517_v49 }
 0x6d3   : > { %v1534_v53 = vmax.f32 %v1531_v51, 0.0 }
 0x6d5   : > { %v1535_v54 = vpack.c.bf16 %v1534_v53, %v1533_v52  ;;  %v3441_v53 = vld [vmem:[%s4454_s5 + $0x98] sm:$0xff] }
 0x6d6   : > { %1897 = vmatpush.bf16.msra.mxu3 %v3441_v53 }
 0x6d7   : > { %2983 = vmatmul.msk.bf16.vlgmr.msra.gmra.mxu1 %vm452_vm3, %v1535_v54  ;;  %v3440_v54 = vld [vmem:[%s4454_s5 + $0x90] sm:$0xff] }
 0x6da   : > { %1898 = vmatpush.bf16.msra.mxu3 %v3440_v54 }
 0x6de   : > { %1899 = vmatpush.bf16.msra.mxu3 %v3439_v55 }
 0x6e2   : > { %1900 = vmatpush.bf16.msra.mxu3 %v3438_v56 }
 0x754   : > { %v1586_v59 = vpop.f32.mrf.mxu1 }
 0x755   : > { %v1587_v61 = vadd.f32 %v3558_v60, %v1586_v59  ;;  %v3447_v59 = vld [vmem:[%s4450_s1 + $0x168] sm:$0xff] }
 0x757   : > { %v4184_v63 = vadd.f32 %v1587_v61, %v3773_v8  ;;  %v3436_v8 = vld [vmem:[%s4452_s3 + $0x1d0] sm:$0xff] }
 0x758   : > { %1840 = vmatpush.bf16.msra.mxu2 %v3436_v8 }
 0x759   : > { %v1593_v2 = vmax.f32 %v4184_v63, 0.0  ;;  %v3461_v63 = vld [vmem:[%s4452_s3 + $0x238] sm:$0xff] }
 0x75a   : > { %2155 = vmatpush.bf16.msra.mxu0 %v3461_v63 }
 0x75c   : > { %v1588_v62 = vpop.f32.mrf.mxu1 }
 0x75d   : > { %v1589_v0 = vadd.f32 %v3558_v60, %v1588_v62  ;;  %v3446_v60 = vld [vmem:[%s4450_s1 + $0x160] sm:$0xff] }
 0x75f   : > { %v4187_v1 = vadd.f32 %v1589_v0, %v3776_v9  ;;  %v3435_v9 = vld [vmem:[%s4452_s3 + $0x1c8] sm:$0xff]  ;;  %v3560_v0 = vld [vmem:[%s4453_s4 + $0x4] ss:$0 sm:$0xff] }
 0x760   : > { %1841 = vmatpush.bf16.msra.mxu2 %v3435_v9 }
 0x761   : > { %v1594_v3 = vmax.f32 %v4187_v1, 0.0  ;;  %v3460_v1 = vld [vmem:[%s4452_s3 + $0x230] sm:$0xff] }
 0x762   : > { %2156 = vmatpush.bf16.msra.mxu0 %v3460_v1 }
 0x763   : > { %v1595_v4 = vpack.c.bf16 %v1594_v3, %v1593_v2 }
 0x764   : > { %1842 = vmatpush.bf16.msra.mxu2 %v3434_v6 }
 0x765   : > { %1674 = vmatmul.bf16.vlgmr.msrb.gmra.mxu0 %v1595_v4 }
 0x768   : > { %1982 = vmatpush.bf16.msrb.mxu2 %v3449_v57 }
 0x76c   : > { %1983 = vmatpush.bf16.msrb.mxu2 %v3448_v58 }
 0x770   : > { %1984 = vmatpush.bf16.msrb.mxu2 %v3447_v59 }
 0x774   : > { %1985 = vmatpush.bf16.msrb.mxu2 %v3446_v60 }
 0x778   : > { %1986 = vmatpush.bf16.msrb.mxu2 %v3445_v14  ;;  %v3463_v14 = vld [vmem:[%s4454_s5 + $0xa8] sm:$0xff] }
 0x7e2   : > { %v1675_v15 = vpop.f32.mrf.mxu0 }
 0x7e3   : > { %v1676_v16 = vadd.f32 %v3559_v13, %v1675_v15  ;;  %v3444_v15 = vld [vmem:[%s4450_s1 + $0x150] sm:$0xff] }
 0x7e4   : > { %1987 = vmatpush.bf16.msrb.mxu2 %v3444_v15  ;;  %v3462_v15 = vld [vmem:[%s4454_s5 + $0xa0] sm:$0xff] }
 0x7e5   : > { %v1680_v18 = vmax.f32 %v1676_v16, 0.0  ;;  %v3443_v16 = vld [vmem:[%s4450_s1 + $0x148] sm:$0xff] }
 0x7e7   : > { %v1684_v21 = vrot.slane %v1680_v18, 7 }
 0x7e8   : > { %1988 = vmatpush.bf16.msrb.mxu2 %v3443_v16  ;;  %v3473_v16 = vld [vmem:[%s4456_s7 + $0x38] sm:$0xff] }
 0x7e9   : > { %v1690_v29 = vsel %vm421_vm0, 0.0, %v1684_v21 }
 0x7ea   : > { %v1677_v25 = vpop.f32.mrf.mxu0  ;;  %v1694_v31 = vrot.slane %v1690_v29, 1  ;;  %v1705_v32 = vrot.slane %v1690_v29, 2 }
 0x7eb   : > { %v1678_v26 = vadd.f32 %v3559_v13, %v1677_v25 }
 0x7ec   : > { %1989 = vmatpush.bf16.msrb.mxu2 %v3442_v17  ;;  %v3472_v17 = vld [vmem:[%s4456_s7 + $0x30] sm:$0xff] }
 0x7ed   : > { %v1681_v27 = vmax.f32 %v1678_v26, 0.0 }
 0x7ef   : > { %v1685_v30 = vrot.slane %v1681_v27, 7 }
 0x7f1   : > { %v1686_v33 = vsel %vm421_vm0, %v1684_v21, %v1685_v30  ;;  %v1691_v34 = vsel %vm421_vm0, %v1685_v30, 0.0 }
 0x7f2   : > { %v1697_v10 = vrot.slane %v1691_v34, 1  ;;  %v1706_v35 = vrot.slane %v1686_v33, 2  ;;  %v1708_v36 = vrot.slane %v1691_v34, 2  ;;  %v1695_v38 = vrot.slane %v1686_v33, 1  ;;  %v3455_v34 = vld [vmem:[%s4452_s3 + $0x208] sm:$0xff] }
 0x7f4   : > { %v1707_v39 = vsel %vm444_vm1, %v1705_v32, %v1706_v35  ;;  %v1709_v40 = vsel %vm444_vm1, %v1706_v35, %v1708_v36  ;;  %v1696_v46 = vsel %vm432_vm2, %v1694_v31, %v1695_v38  ;;  %v1698_v20 = vsel %vm432_vm2, %v1695_v38, %v1697_v10  ;;  %v3457_v32 = vld [vmem:[%s4452_s3 + $0x218] sm:$0xff]  ;;  %v3562_v10 = vld [vmem:[%s4451_s2 + $0x5] ss:$0 sm:$0xff] }
 0x7f5   : > { %v1715_v22 = vpack.c.bf16 %v1709_v40, %v1707_v39  ;;  %v3537_v23 = vpack.i.bf16 %v1698_v20, %v1696_v46  ;;  %2137 = vmatpush.bf16.msrb.mxu3 %v3457_v32  ;;  %v3454_v35 = vld [vmem:[%s4452_s3 + $0x200] sm:$0xff]  ;;  %v3453_v39 = vld [vmem:[%s4452_s3 + $0x1f8] sm:$0xff]  ;;  %v3452_v46 = vld [vmem:[%s4452_s3 + $0x1f0] sm:$0xff] }
 0x7f7   : > { %3106 = vmatmul.msk.bf16.vlgmr.msra.gmra.mxu2 %vm452_vm3, %v1715_v22  ;;  %3538 = vrot.lane.b32.xlu2 %v3537_v23, %s3640_s17 }
 0x851   : > { %v3539_v47 = vpop.permute.xlu2 %3538 }
 0x852   : > { %v3541_v48 = vunpack.i.h.bf16 %v3539_v47  ;;  %v3540_v49 = vunpack.i.l.bf16 %v3539_v47  ;;  %v3451_v47 = vld [vmem:[%s4452_s3 + $0x1e8] sm:$0xff] }
 0x854   : > { %v1713_v50 = vsel %vm452_vm3, %v1686_v33, %v3541_v48  ;;  %v1712_v51 = vsel %vm452_vm3, %v1690_v29, %v3540_v49  ;;  %v3456_v33 = vld [vmem:[%s4452_s3 + $0x210] sm:$0xff] }
 0x855   : > { %v1714_v52 = vpack.c.bf16 %v1713_v50, %v1712_v51  ;;  %2138 = vmatpush.bf16.msrb.mxu3 %v3456_v33 }
 0x857   : > { %1829 = vmatmul.bf16.vlgmr.msrb.gmra.mxu1 %v1714_v52 }
 0x859   : > { %2139 = vmatpush.bf16.msrb.mxu3 %v3455_v34 }
 0x85d   : > { %2140 = vmatpush.bf16.msrb.mxu3 %v3454_v35  ;;  %v3469_v35 = vld [vmem:[%s4456_s7 + $0x18] sm:$0xff] }
 0x861   : > { %2141 = vmatpush.bf16.msrb.mxu3 %v3453_v39  ;;  %v3466_v39 = vld [vmem:[%s4456_s7] sm:$0xff] }
 0x865   : > { %2142 = vmatpush.bf16.msrb.mxu3 %v3452_v46  ;;  %v3564_v46 = vld [vmem:[%s4455_s6 + $0x5] ss:$0 sm:$0xff] }
 0x869   : > { %2143 = vmatpush.bf16.msrb.mxu3 %v3451_v47 }
 0x87a   : > { %v1844_v61 = vpop.f32.mrf.mxu2 }
 0x882   : > { %v1846_v6 = vpop.f32.mrf.mxu2 }
 0x8d4   : > { %v1830_v62 = vpop.f32.mrf.mxu1 }
 0x8d5   : > { %v1831_v4 = vadd.f32 %v3560_v0, %v1830_v62 }
 0x8d7   : > { %v1845_v8 = vadd.f32 %v1844_v61, %v1831_v4  ;;  %v3450_v4 = vld [vmem:[%s4452_s3 + $0x1e0] sm:$0xff] }
 0x8d8   : > { %2144 = vmatpush.bf16.msrb.mxu3 %v3450_v4 }
 0x8d9   : > { %v1849_v11 = vmax.f32 %v1845_v8, 0.0 }
 0x8dc   : > { %v1832_v5 = vpop.f32.mrf.mxu1 }
 0x8dd   : > { %v1833_v9 = vadd.f32 %v3560_v0, %v1832_v5 }
 0x8df   : > { %v1847_v7 = vadd.f32 %v1846_v6, %v1833_v9 }
 0x8e1   : > { %v1850_v12 = vmax.f32 %v1847_v7, 0.0 }
 0x8e3   : > { %v1851_v13 = vpack.c.bf16 %v1850_v12, %v1849_v11  ;;  %v3465_v12 = vld [vmem:[%s4454_s5 + $0xb8] sm:$0xff] }
 0x8e4   : > { %2213 = vmatpush.bf16.msra.mxu1 %v3465_v12 }
 0x8e5   : > { %3132 = vmatmul.msk.bf16.vlgmr.msra.gmra.mxu3 %vm452_vm3, %v1851_v13  ;;  %v3464_v13 = vld [vmem:[%s4454_s5 + $0xb0] sm:$0xff] }
 0x8e8   : > { %2214 = vmatpush.bf16.msra.mxu1 %v3464_v13 }
 0x8ec   : > { %2215 = vmatpush.bf16.msra.mxu1 %v3463_v14 }
 0x8f0   : > { %2216 = vmatpush.bf16.msra.mxu1 %v3462_v15 }
 0x968   : > { %v1902_v18 = vpop.f32.mrf.mxu3 }
 0x969   : > { %v1903_v21 = vadd.f32 %v3561_v19, %v1902_v18  ;;  %v3471_v18 = vld [vmem:[%s4456_s7 + $0x28] sm:$0xff] }
 0x96b   : > { %v4290_v26 = vadd.f32 %v1903_v21, %v1593_v2  ;;  %v3459_v2 = vld [vmem:[%s4452_s3 + $0x228] sm:$0xff] }
 0x96c   : > { %2157 = vmatpush.bf16.msra.mxu0 %v3459_v2 }
 0x96d   : > { %v1909_v29 = vmax.f32 %v4290_v26, 0.0 }
 0x970   : > { %v1904_v25 = vpop.f32.mrf.mxu3 }
 0x971   : > { %v1905_v27 = vadd.f32 %v3561_v19, %v1904_v25  ;;  %v3470_v19 = vld [vmem:[%s4456_s7 + $0x20] sm:$0xff] }
 0x973   : > { %v4294_v28 = vadd.f32 %v1905_v27, %v1594_v3  ;;  %v3458_v3 = vld [vmem:[%s4452_s3 + $0x220] sm:$0xff] }
 0x974   : > { %2158 = vmatpush.bf16.msra.mxu0 %v3458_v3  ;;  %v3563_v27 = vld [vmem:[%s4453_s4 + $0x5] ss:$0 sm:$0xff] }
 0x975   : > { %v1910_v30 = vmax.f32 %v4294_v28, 0.0  ;;  %v3556_v28 = vld [vmem:[%s4455_s6 + $0x2] ss:$0 sm:$0xff] }
 0x977   : > { %v1911_v31 = vpack.c.bf16 %v1910_v30, %v1909_v29 }
 0x978   : > { %2296 = vmatpush.bf16.msrb.mxu0 %v3473_v16 }
 0x979   : > { %1990 = vmatmul.bf16.vlgmr.msrb.gmra.mxu2 %v1911_v31 }
 0x97c   : > { %2297 = vmatpush.bf16.msrb.mxu0 %v3472_v17 }
 0x980   : > { %2298 = vmatpush.bf16.msrb.mxu0 %v3471_v18  ;;  %v3574_v18 = vld [vmem:[%s3767_s27] sm:$0xff] }
 0x984   : > { %2299 = vmatpush.bf16.msrb.mxu0 %v3470_v19 }
 0x988   : > { %2300 = vmatpush.bf16.msrb.mxu0 %v3469_v35 }
 0x9fc   : > { %v1991_v36 = vpop.f32.mrf.mxu2 }
 0x9fd   : > { %v1992_v38 = vadd.f32 %v3562_v10, %v1991_v36  ;;  %v3468_v36 = vld [vmem:[%s4456_s7 + $0x10] sm:$0xff] }
 0x9fe   : > { %2301 = vmatpush.bf16.msrb.mxu0 %v3468_v36 }
 0x9ff   : > { %v1996_v40 = vmax.f32 %v1992_v38, 0.0  ;;  %v3467_v38 = vld [vmem:[%s4456_s7 + $0x8] sm:$0xff] }
 0xa01   : > { %v2000_v20 = vrot.slane %v1996_v40, 7 }
 0xa02   : > { %2302 = vmatpush.bf16.msrb.mxu0 %v3467_v38 }
 0xa03   : > { %v2006_v48 = vsel %vm421_vm0, 0.0, %v2000_v20 }
 0xa04   : > { %v1993_v22 = vpop.f32.mrf.mxu2  ;;  %v2010_v50 = vrot.slane %v2006_v48, 1  ;;  %v2021_v51 = vrot.slane %v2006_v48, 2 }
 0xa05   : > { %v1994_v23 = vadd.f32 %v3562_v10, %v1993_v22 }
 0xa06   : > { %2303 = vmatpush.bf16.msrb.mxu0 %v3466_v39 }
 0xa07   : > { %v1997_v24 = vmax.f32 %v1994_v23, 0.0 }
 0xa09   : > { %v2001_v49 = vrot.slane %v1997_v24, 7 }
 0xa0b   : > { %v2002_v52 = vsel %vm421_vm0, %v2000_v20, %v2001_v49  ;;  %v2007_v53 = vsel %vm421_vm0, %v2001_v49, 0.0 }
 0xa0c   : > { %v2011_v54 = vrot.slane %v2002_v52, 1  ;;  %v2013_v55 = vrot.slane %v2007_v53, 1  ;;  %v2022_v56 = vrot.slane %v2002_v52, 2  ;;  %v2024_v57 = vrot.slane %v2007_v53, 2 }
 0xa0e   : > { %v2023_v58 = vsel %vm444_vm1, %v2021_v51, %v2022_v56  ;;  %v2025_v59 = vsel %vm444_vm1, %v2022_v56, %v2024_v57  ;;  %v2012_v60 = vsel %vm432_vm2, %v2010_v50, %v2011_v54  ;;  %v2014_v61 = vsel %vm432_vm2, %v2011_v54, %v2013_v55  ;;  %v3565_v51 = vld [vmem:[%s4457_s8] ss:$0 sm:$0xff] }
 0xa0f   : > { %v2031_v62 = vpack.c.bf16 %v2025_v59, %v2023_v58  ;;  %v3542_v0 = vpack.i.bf16 %v2014_v61, %v2012_v60  ;;  %v1272_v60 = vadd.f32 %v3556_v28, %v4148_v37 }
 0xa11   : > { %3255 = vmatmul.msk.bf16.vlgmr.msra.gmra.mxu0 %vm452_vm3, %v2031_v62  ;;  %3543 = vrot.lane.b32.xlu2 %v3542_v0, %s3640_s17  ;;  %v1276_v4 = vadd.f32 %v1272_v60, %v962_v44  ;;  %s3596_s17 = scalar_lea.hbm %s4458_s9, 32 }
 0xa12   : > { %p3598_p1 = scmp.lt.s32.totalorder %s3596_s17, %s3592_s14 }
 0xa14   : > { %p3599_p2 = por %p3598_p1, %p3597_p0 }
 0xa16   : > { %p3600_p3 = pnand %p3599_p2, %p3595_p13 }
 0xa6b   : > { %v3544_v5 = vpop.permute.xlu2 %3543 }
 0xa6c   : > { %v3546_v8 = vunpack.i.h.bf16 %v3544_v5  ;;  %v3545_v9 = vunpack.i.l.bf16 %v3544_v5 }
 0xa6e   : > { %v2029_v6 = vsel %vm452_vm3, %v2002_v52, %v3546_v8  ;;  %v2028_v7 = vsel %vm452_vm3, %v2006_v48, %v3545_v9 }
 0xa6f   : > { %v2030_v11 = vpack.c.bf16 %v2029_v6, %v2028_v7  ;;  %v1274_v7 = vadd.f32 %v3556_v28, %v4159_v42 }
 0xa71   : > { %2145 = vmatmul.bf16.vlgmr.msrb.gmra.mxu3 %v2030_v11  ;;  %v1278_v11 = vmax.f32 %v1276_v4, 0.0  ;;  %v1277_v15 = vadd.f32 %v1274_v7, %v963_v45 }
 0xa73   : > { %v1279_v43 = vmax.f32 %v1277_v15, 0.0 }
 0xa8e   : > { %v2160_v21 = vpop.f32.mrf.mxu0 }
 0xa96   : > { %v2162_v3 = vpop.f32.mrf.mxu0 }
 0xaf4   : > { %v2146_v25 = vpop.f32.mrf.mxu3 }
 0xaf5   : > { %v2147_v31 = vadd.f32 %v3563_v27, %v2146_v25 }
 0xaf7   : > { %v2161_v1 = vadd.f32 %v2160_v21, %v2147_v31 }
 0xaf9   : > { %v2165_v33 = vmax.f32 %v2161_v1, 0.0 }
 0xafc   : > { %v2148_v63 = vpop.f32.mrf.mxu3 }
 0xafd   : > { %v2149_v2 = vadd.f32 %v3563_v27, %v2148_v63  ;;  %v3575_v63 = vld [vmem:[%s3767_s27 + $0x8] sm:$0xff] }
 0xaff   : > { %v2163_v32 = vadd.f32 %v2162_v3, %v2149_v2 }
 0xb01   : > { %v2166_v34 = vmax.f32 %v2163_v32, 0.0 }
 0xb03   : > { %v2167_v10 = vpack.c.bf16 %v2166_v34, %v2165_v33 }
 0xb05   : > { %3281 = vmatmul.msk.bf16.vlgmr.msra.gmra.mxu1 %vm452_vm3, %v2167_v10 }
 0xb82   : > { %v2218_v40 = vpop.f32.mrf.mxu1 }
 0xb83   : > { %v2219_v20 = vadd.f32 %v3564_v46, %v2218_v40 }
 0xb85   : > { %v2223_v23 = vadd.f32 %v2219_v20, %v1909_v29 }
 0xb87   : > { %v2225_v48 = vmax.f32 %v2223_v23, 0.0 }
 0xb8a   : > { %v2220_v22 = vpop.f32.mrf.mxu1 }
 0xb8b   : > { %v2221_v24 = vadd.f32 %v3564_v46, %v2220_v22 }
 0xb8d   : > { %v2224_v47 = vadd.f32 %v2221_v24, %v1910_v30 }
 0xb8f   : > { %v2226_v49 = vmax.f32 %v2224_v47, 0.0 }
 0xb91   : > { %v2227_v50 = vpack.c.bf16 %v2226_v49, %v2225_v48 }
 0xb93   : > { %2304 = vmatmul.bf16.vlgmr.msrb.gmra.mxu0 %v2227_v50 }
 0xc10   : > { %v2305_v52 = vpop.f32.mrf.mxu0 }
 0xc11   : > { %v2306_v53 = vadd.f32 %v3565_v51, %v2305_v52 }
 0xc13   : > { %v3314_v54 = vmul.f32 -1.442695, %v2306_v53 }
 0xc15   : > { %3566 = vpow2.f32 %v3314_v54 }
 0xc18   : > { %v2307_v55 = vpop.f32.mrf.mxu0 }
 0xc19   : > { %v2308_v56 = vadd.f32 %v3565_v51, %v2307_v55 }
 0xc1b   : > { %v3567_v26 = vpop.eup %3566  ;;  %v3315_v29 = vmul.f32 -1.442695, %v2308_v56 }
 0xc1c   : > { %v2316_v57 = vadd.f32 1.0, %v3567_v26 }
 0xc1d   : > { %3568 = vpow2.f32 %v3315_v29 }
 0xc1e   : > { %3570 = vrcp.f32 %v2316_v57  ;;  %v2329_v0 = vand.u32 2147483648, %v2316_v57  ;;  %v2327_v8 = vand.u32 2147483647, %v2316_v57  ;;  %vm2323_vm5 = vweird.f32 %v2316_v57 }
 0xc20   : > { %v2330_v37 = vor.u32 1.1754944e-38, %v2329_v0  ;;  %vm2328_vm7 = vcmp.eq.f32.partialorder %v2327_v8, 8.507059e+37 }
 0xc23   : > { %v3569_v30 = vpop.eup %3568 }
 0xc24   : > { %v3571_v58 = vpop.eup %3570  ;;  %v2317_v59 = vadd.f32 1.0, %v3569_v30 }
 0xc25   : > { %v2319_v61 = vmul.f32 %v3571_v58, %v2316_v57  ;;  %vm2324_vm4 = vweird.f32 %v3571_v58 }
 0xc26   : > { %3572 = vrcp.f32 %v2317_v59  ;;  %vm2325_vm6 = vmor %vm2323_vm5, %vm2324_vm4  ;;  %v2344_v16 = vand.u32 2147483648, %v2317_v59  ;;  %v2342_v42 = vand.u32 2147483647, %v2317_v59  ;;  %vm2338_vm9 = vweird.f32 %v2317_v59 }
 0xc27   : > { %v2320_v62 = vsub.f32 1.0, %v2319_v61 }
 0xc28   : > { %v2345_v25 = vor.u32 1.1754944e-38, %v2344_v16  ;;  %vm2343_vm11 = vcmp.eq.f32.partialorder %v2342_v42, 8.507059e+37 }
 0xc29   : > { %v2321_v5 = vmul.f32 %v3571_v58, %v2320_v62 }
 0xc2b   : > { %v2322_v9 = vadd.f32 %v3571_v58, %v2321_v5 }
 0xc2c   : > { %v3573_v6 = vpop.eup %3572 }
 0xc2d   : > { %v2334_v12 = vmul.f32 %v3573_v6, %v2317_v59  ;;  %v2326_v41 = vsel %vm2325_vm6, %v3571_v58, %v2322_v9  ;;  %vm2339_vm8 = vweird.f32 %v3573_v6 }
 0xc2e   : > { %v2331_v44 = vsel %vm2328_vm7, %v2330_v37, %v2326_v41  ;;  %vm2340_vm10 = vmor %vm2338_vm9, %vm2339_vm8 }
 0xc2f   : > { %v2335_v13 = vsub.f32 1.0, %v2334_v12  ;;  %v2348_v14 = vmul.f32 %v2331_v44, %v1278_v11 }
 0xc31   : > { %v2336_v17 = vmul.f32 %v3573_v6, %v2335_v13  ;;  %v2350_v19 = vadd.f32 %v3574_v18, %v2348_v14 }
 0xc33   : > { %v2337_v21 = vadd.f32 %v3573_v6, %v2336_v17  ;;  %2352 = vst [vmem:[%s325_s25] sm:$0xff] %v2350_v19 }
 0xc35   : > { %v2341_v45 = vsel %vm2340_vm10, %v3573_v6, %v2337_v21 }
 0xc36   : > { %v2346_v27 = vsel %vm2343_vm11, %v2345_v25, %v2341_v45 }
 0xc37   : > { %v2349_v31 = vmul.f32 %v2346_v27, %v1279_v43 }
 0xc39   : > { %v2351_v1 = vadd.f32 %v3575_v63, %v2349_v31 }
 0xc3b   : > { %2353 = vst [vmem:[%s325_s25 + $0x8] sm:$0xff] %v2351_v1 }
 0xc3c   : > { %3603 = shalt.err (!%p3600_p3)
}
 0xc3d   : > { %s3641_s27 = smov 128   ;;  %s3642_s16 = smov 8  }
 0xc3e   : > { %3475 = dma.vmem_to_hbm [thread:$0]  (%p3731_p5), %s2368_s13, 256, %s2370_s26, %s2355_s28, %s3641_s27, %s3641_s27, %s3642_s16  }
 0xc3f PF: > { %p3481_p4 = scmp.ge.s32.totalorder %s3638_s12, 2  ;;  %s2384_s25 = sand.u32 1, %s3626_s30  }
 0xc40   : > { %s2385_s21 = scalar_lea.sflag [#allocation3], %s2384_s25 }
 0xc41   : > { %p3478_p7 = pnand %p3481_p4, %p3735_p6 }
 0xc43   : > { %p3479_p8 = pneg %p3478_p7 }
 0xc45   : > { %3621 = dma.done.wait (%p3479_p8), %s2385_s21, 256  }
 0xc46   : > { %3623 = vsyncadd (%p3479_p8), %s2385_s21, 4294967040  ;;  %p19_p9 = scmp.ge.s32.totalorder %s3718_s15, 4   ;;  %s4461_s30 = smov %s3630_s10 }
 0xc47   : > { %s4462_s10 = smov %s3634_s11  ;;  %s4463_s11 = smov %s3729_s18 }
 0xc48   : > { %s4464_s12 = smov %s3718_s15  ;;  %21 = sbr.rel (!%p19_p9) target bundleno = 3 (0x3), region = 121 }
 0xc4d   :  { %2391 = vsyncpa [#allocation3], 1 }
 0xc4e   :  { %2393 = vsyncpa [#allocation3 + $0x1], 1 }

</bundles_post_ra>
